<compile_context>
chip_gen: v7x
topology: tpu7x:2x2x1
jax: 0.10.0
libtpu: 0.0.40
codegen_flags: <defaults>
</compile_context>

<pallas_src>
import math

import jax
import jax.numpy as jnp
from jax.experimental import pallas as pl
from jax.experimental.pallas import tpu as pltpu  # noqa: F401  (kept for TPU-specific params if needed)

# ---------------- synthetic "AutoModel" config (small) ----------------
VOCAB = 100
NUM_LAYERS = 2
NUM_HEADS = 4
HIDDEN = 32          # -> self.hidden_size / self.in_size_heads in BaseModel
FFN = 64
SEQ = 8
BATCH = 2
EPS = 1e-12

# padded, lane-dense sizes
HP = 128                         # hidden padded to one full vreg lane width
FP = 128                         # FFN intermediate padded
DH = HIDDEN // NUM_HEADS         # 8  (true head dim; used for the 1/sqrt(dh) scale)
DHP = HP // NUM_HEADS            # 32 (padded, head-blocked head dim)
BS = BATCH * SEQ                 # 16 rows processed in one block
assert FP == HP, "packed vector params assume FP == HP"

# rows of the packed per-layer vector params (L, 10, HP)
VEC_BQ, VEC_BK, VEC_BV, VEC_BO, VEC_B1, VEC_B2, VEC_G1, VEC_BE1, VEC_G2, VEC_BE2 = range(10)
NUM_VEC = 10


# ---------------- in-kernel helpers ----------------
def _layer_norm_padded(x, gamma, beta):
    """LayerNorm over the first HIDDEN lanes of a zero-padded [*, HP] activation.

    Padded lanes stay exactly zero because gamma/beta are zero-padded and the
    sums only see zeros there (E[x^2] - E[x]^2 form avoids masking).
    """
    inv_h = 1.0 / HIDDEN
    mean = jnp.sum(x, axis=-1, keepdims=True) * inv_h
    meansq = jnp.sum(x * x, axis=-1, keepdims=True) * inv_h
    var = jnp.maximum(meansq - mean * mean, 0.0)
    return (x - mean) * jax.lax.rsqrt(var + EPS) * gamma + beta


# ---------------- the single fused Pallas kernel ----------------
def fused_encoder_kernel(x_ref, maskb_ref, ln_emb_ref,
                         wqkv_ref, wo_ref, w1_ref, w2_ref, vec_ref,
                         o_ref):
    # x_ref:     (BS, HP)  zero-padded embeddings
    # maskb_ref: (BS, BS)  additive attention bias (batch block-diagonal + key padding)
    # ln_emb_ref:(2, HP)   embedding LayerNorm gamma/beta
    # wqkv_ref:  (L, HP, 3*HP), wo_ref: (L, HP, HP), w1_ref: (L, HP, FP), w2_ref: (L, FP, HP)
    # vec_ref:   (L, NUM_VEC, HP) packed biases / LN params
    x = _layer_norm_padded(x_ref[...], ln_emb_ref[0:1, :], ln_emb_ref[1:2, :])
    mask_bias = maskb_ref[...]
    scale = 1.0 / math.sqrt(DH)

    for layer in range(NUM_LAYERS):            # static unrolled layer loop, all in VMEM
        wqkv = wqkv_ref[layer]                 # (HP, 3*HP)
        wo = wo_ref[layer]                     # (HP, HP), rows head-blocked
        w1 = w1_ref[layer]                     # (HP, FP)
        w2 = w2_ref[layer]                     # (FP, HP)
        vec = vec_ref[layer]                   # (NUM_VEC, HP)

        # fused QKV projection: one full-lane matmul
        qkv = jnp.dot(x, wqkv, preferred_element_type=jnp.float32)   # (BS, 3*HP)
        q = qkv[:, 0 * HP:1 * HP] + vec[VEC_BQ:VEC_BQ + 1, :]
        k = qkv[:, 1 * HP:2 * HP] + vec[VEC_BK:VEC_BK + 1, :]
        v = qkv[:, 2 * HP:3 * HP] + vec[VEC_BV:VEC_BV + 1, :]

        # multi-head attention over the whole (B*S) block; cross-batch attention is
        # killed by the block-diagonal additive mask.  No concatenate: each head's
        # context is folded directly into its slice of the output projection.
        acc = jnp.zeros_like(x)
        for h in range(NUM_HEADS):             # small static loop, 32-lane head blocks
            lo = h * DHP
            qh = q[:, lo:lo + DHP]
            kh = k[:, lo:lo + DHP]
            vh = v[:, lo:lo + DHP]
            s = jnp.dot(qh, kh.T, preferred_element_type=jnp.float32) * scale  # (BS, BS)
            s = s + mask_bias
            s = s - jnp.max(s, axis=-1, keepdims=True)
            p = jnp.exp(s)
            p = p * pl.reciprocal(jnp.sum(p, axis=-1, keepdims=True), approx=True)
            ctx = jnp.dot(p, vh, preferred_element_type=jnp.float32)           # (BS, DHP)
            acc = acc + jnp.dot(ctx, wo[lo:lo + DHP, :],
                                preferred_element_type=jnp.float32)            # (BS, HP)

        attn_out = acc + vec[VEC_BO:VEC_BO + 1, :]
        h1 = _layer_norm_padded(x + attn_out,
                                vec[VEC_G1:VEC_G1 + 1, :], vec[VEC_BE1:VEC_BE1 + 1, :])

        ff = jnp.dot(h1, w1, preferred_element_type=jnp.float32) + vec[VEC_B1:VEC_B1 + 1, :]
        # TODO(synk): HF BERT's default activation is exact erf-GELU; tanh approximation
        # is used here for guaranteed Mosaic lowering (gelu(0)=0 keeps padded lanes zero).
        ff = jax.nn.gelu(ff, approximate=True)
        ff = jnp.dot(ff, w2, preferred_element_type=jnp.float32) + vec[VEC_B2:VEC_B2 + 1, :]

        x = _layer_norm_padded(h1 + ff,
                               vec[VEC_G2:VEC_G2 + 1, :], vec[VEC_BE2:VEC_BE2 + 1, :])

    o_ref[...] = x                             # single lane-dense (BS, HP) store


def fused_forward(x_emb_p, mask_bias, packed):
    # One pallas_call, no grid: all operands are whole-array VMEM residents
    # (< 1 MiB total), so there is exactly one launch and zero intermediate HBM traffic.
    return pl.pallas_call(
        fused_encoder_kernel,
        out_shape=jax.ShapeDtypeStruct((BS, HP), jnp.float32),
    )(x_emb_p, mask_bias, packed["ln_emb"], packed["wqkv"], packed["wo"],
      packed["w1"], packed["w2"], packed["vec"])


# ---------------- deterministic parameter init (synthetic encoder) ----------------
def init_params():
    key = jax.random.PRNGKey(42)
    n_keys_per_layer = 8
    keys = jax.random.split(key, 4 + NUM_LAYERS * n_keys_per_layer)

    def dense(k, fan_in, fan_out):
        return jax.random.normal(k, (fan_in, fan_out), jnp.float32) * 0.02

    params = {
        "word_emb": jax.random.normal(keys[0], (VOCAB, HIDDEN), jnp.float32) * 0.02,
        "pos_emb": jax.random.normal(keys[1], (SEQ, HIDDEN), jnp.float32) * 0.02,
        "tok_emb": jax.random.normal(keys[2], (1, HIDDEN), jnp.float32) * 0.02,
        "emb_ln_g": jnp.ones((1, HIDDEN), jnp.float32),
        "emb_ln_b": jnp.zeros((1, HIDDEN), jnp.float32),
        "layers": [],
    }
    for li in range(NUM_LAYERS):
        lk = keys[4 + li * n_keys_per_layer: 4 + (li + 1) * n_keys_per_layer]
        params["layers"].append({
            "wq": dense(lk[0], HIDDEN, HIDDEN), "bq": jnp.zeros((1, HIDDEN), jnp.float32),
            "wk": dense(lk[1], HIDDEN, HIDDEN), "bk": jnp.zeros((1, HIDDEN), jnp.float32),
            "wv": dense(lk[2], HIDDEN, HIDDEN), "bv": jnp.zeros((1, HIDDEN), jnp.float32),
            "wo": dense(lk[3], HIDDEN, HIDDEN), "bo": jnp.zeros((1, HIDDEN), jnp.float32),
            "g1": jnp.ones((1, HIDDEN), jnp.float32), "be1": jnp.zeros((1, HIDDEN), jnp.float32),
            "w1": dense(lk[4], HIDDEN, FFN), "b1": jnp.zeros((1, FFN), jnp.float32),
            "w2": dense(lk[5], FFN, HIDDEN), "b2": jnp.zeros((1, HIDDEN), jnp.float32),
            "g2": jnp.ones((1, HIDDEN), jnp.float32), "be2": jnp.zeros((1, HIDDEN), jnp.float32),
        })
    return params


# ---------------- host-side packing: pad to lane-dense, head-blocked layout ----------------
def _pad_to(a, shape):
    out = jnp.zeros(shape, a.dtype)
    return out.at[tuple(slice(0, s) for s in a.shape)].set(a)


def _head_block_cols(w):
    """(..., NUM_HEADS*DH) -> (..., NUM_HEADS*DHP): head h's DH cols land at h*DHP."""
    out = jnp.zeros(w.shape[:-1] + (NUM_HEADS * DHP,), w.dtype)
    for h in range(NUM_HEADS):
        out = out.at[..., h * DHP:h * DHP + DH].set(w[..., h * DH:(h + 1) * DH])
    return out


def _head_block_rows(w):
    """(NUM_HEADS*DH, N) -> (NUM_HEADS*DHP, N): head h's DH rows land at h*DHP."""
    out = jnp.zeros((NUM_HEADS * DHP,) + w.shape[1:], w.dtype)
    for h in range(NUM_HEADS):
        out = out.at[h * DHP:h * DHP + DH, :].set(w[h * DH:(h + 1) * DH, :])
    return out


def pack_params(params):
    ln_emb = jnp.concatenate([_pad_to(params["emb_ln_g"], (1, HP)),
                              _pad_to(params["emb_ln_b"], (1, HP))], axis=0)   # (2, HP)
    wqkv_l, wo_l, w1_l, w2_l, vec_l = [], [], [], [], []
    for lp in params["layers"]:
        wq = _pad_to(_head_block_cols(lp["wq"]), (HP, HP))
        wk = _pad_to(_head_block_cols(lp["wk"]), (HP, HP))
        wv = _pad_to(_head_block_cols(lp["wv"]), (HP, HP))
        wqkv_l.append(jnp.concatenate([wq, wk, wv], axis=1))                    # (HP, 3*HP)
        wo_l.append(_pad_to(_head_block_rows(lp["wo"]), (HP, HP)))              # (HP, HP)
        w1_l.append(_pad_to(lp["w1"], (HP, FP)))                                # (HP, FP)
        w2_l.append(_pad_to(lp["w2"], (FP, HP)))                                # (FP, HP)
        vec_l.append(jnp.concatenate([
            _head_block_cols(lp["bq"]),
            _head_block_cols(lp["bk"]),
            _head_block_cols(lp["bv"]),
            _pad_to(lp["bo"], (1, HP)),
            _pad_to(lp["b1"], (1, FP)),
            _pad_to(lp["b2"], (1, HP)),
            _pad_to(lp["g1"], (1, HP)),
            _pad_to(lp["be1"], (1, HP)),
            _pad_to(lp["g2"], (1, HP)),
            _pad_to(lp["be2"], (1, HP)),
        ], axis=0))                                                             # (NUM_VEC, HP)
    return {
        "ln_emb": ln_emb,
        "wqkv": jnp.stack(wqkv_l),
        "wo": jnp.stack(wo_l),
        "w1": jnp.stack(w1_l),
        "w2": jnp.stack(w2_l),
        "vec": jnp.stack(vec_l),
    }


# ---------------- BaseModel._forward equivalent ----------------
def base_model_forward(params, packed, input_ids, attention_mask):
    """Equivalent of BaseModel._forward: encoder(**x)[0][:, 0]  ->  [B, H]."""
    B, S = input_ids.shape
    # embedding lookup is glue (gather) in plain JAX
    x = (jnp.take(params["word_emb"], input_ids, axis=0)
         + params["pos_emb"][None, :, :]
         + params["tok_emb"][None, :, :])                       # [B, S, H]
    x = x.reshape(B * S, HIDDEN)
    x_p = _pad_to(x, (B * S, HP))                               # lane-dense, zero-padded

    # combined additive attention bias: block-diagonal over batch + key padding mask
    flat_valid = attention_mask.reshape(-1).astype(jnp.float32)            # (B*S,)
    batch_ids = jnp.arange(B * S) // S
    same_batch = (batch_ids[:, None] == batch_ids[None, :]).astype(jnp.float32)
    mask_bias = (1.0 - same_batch * flat_valid[None, :]) * (-1e9)          # (B*S, B*S)

    y = fused_forward(x_p, mask_bias, packed)                   # (B*S, HP)
    return y.reshape(B, S, HP)[:, 0, :HIDDEN]                   # CLS vector, [B, H]


if __name__ == "__main__":
    params = init_params()
    packed = pack_params(params)

    key = jax.random.PRNGKey(0)
    k_ids, _ = jax.random.split(key)
    input_ids = jax.random.randint(k_ids, (BATCH, SEQ), 0, VOCAB, dtype=jnp.int32)
    attention_mask = jnp.ones((BATCH, SEQ), jnp.int32)
    attention_mask = attention_mask.at[1, SEQ - 2:].set(0)      # pad last 2 tokens of sample 1

    fwd = jax.jit(base_model_forward)
    out = fwd(params, packed, input_ids, attention_mask)
    out = jax.block_until_ready(out)
    assert out.shape == (BATCH, HIDDEN) and out.dtype == jnp.float32
    assert bool(jnp.all(jnp.isfinite(out)))
    print("KERNEL_OK")
</pallas_src>

<mosaic_0001>
module attributes {stable_mosaic.version = 11 : i64} {
  func.func @fused_encoder_kernel(%arg0: memref<16x128xf32, #tpu.memory_space<vmem>>, %arg1: memref<16x16xf32, #tpu.memory_space<vmem>>, %arg2: memref<2x128xf32, #tpu.memory_space<vmem>>, %arg3: memref<2x128x384xf32, #tpu.memory_space<vmem>>, %arg4: memref<2x128x128xf32, #tpu.memory_space<vmem>>, %arg5: memref<2x128x128xf32, #tpu.memory_space<vmem>>, %arg6: memref<2x128x128xf32, #tpu.memory_space<vmem>>, %arg7: memref<2x10x128xf32, #tpu.memory_space<vmem>>, %arg8: memref<16x128xf32, #tpu.memory_space<vmem>>) attributes {dimension_semantics = [], scalar_prefetch = 0 : i64, scratch_operands = 0 : i64, tpu.core_type = #tpu.core_type<tc>} {
    %c0 = arith.constant 0 : index
    %c0_0 = arith.constant 0 : index
    %0 = vector.load %arg0[%c0, %c0_0] : memref<16x128xf32, #tpu.memory_space<vmem>>, vector<16x128xf32>
    %c0_1 = arith.constant 0 : index
    %c0_2 = arith.constant 0 : index
    %1 = vector.load %arg2[%c0_1, %c0_2] : memref<2x128xf32, #tpu.memory_space<vmem>>, vector<1x128xf32>
    %c1 = arith.constant 1 : index
    %c0_3 = arith.constant 0 : index
    %2 = vector.load %arg2[%c1, %c0_3] : memref<2x128xf32, #tpu.memory_space<vmem>>, vector<1x128xf32>
    %cst = arith.constant dense<0.000000e+00> : vector<16xf32>
    %3 = vector.multi_reduction <add>, %0, %cst [1] : vector<16x128xf32> to vector<16xf32>
    %4 = vector.shape_cast %3 : vector<16xf32> to vector<16x1xf32>
    %cst_4 = arith.constant 3.125000e-02 : f32
    %5 = vector.broadcast %cst_4 : f32 to vector<16x1xf32>
    %6 = arith.mulf %4, %5 : vector<16x1xf32>
    %7 = arith.mulf %0, %0 : vector<16x128xf32>
    %cst_5 = arith.constant dense<0.000000e+00> : vector<16xf32>
    %8 = vector.multi_reduction <add>, %7, %cst_5 [1] : vector<16x128xf32> to vector<16xf32>
    %9 = vector.shape_cast %8 : vector<16xf32> to vector<16x1xf32>
    %cst_6 = arith.constant 3.125000e-02 : f32
    %10 = vector.broadcast %cst_6 : f32 to vector<16x1xf32>
    %11 = arith.mulf %9, %10 : vector<16x1xf32>
    %12 = arith.mulf %6, %6 : vector<16x1xf32>
    %13 = arith.subf %11, %12 : vector<16x1xf32>
    %cst_7 = arith.constant 0.000000e+00 : f32
    %14 = vector.broadcast %cst_7 : f32 to vector<16x1xf32>
    %15 = arith.maximumf %13, %14 : vector<16x1xf32>
    %16 = vector.broadcast %6 : vector<16x1xf32> to vector<16x128xf32>
    %17 = arith.subf %0, %16 : vector<16x128xf32>
    %cst_8 = arith.constant 9.99999996E-13 : f32
    %18 = vector.broadcast %cst_8 : f32 to vector<16x1xf32>
    %19 = arith.addf %15, %18 : vector<16x1xf32>
    %20 = math.rsqrt %19 : vector<16x1xf32>
    %21 = vector.broadcast %20 : vector<16x1xf32> to vector<16x128xf32>
    %22 = arith.mulf %17, %21 : vector<16x128xf32>
    %23 = vector.broadcast %1 : vector<1x128xf32> to vector<16x128xf32>
    %24 = arith.mulf %22, %23 : vector<16x128xf32>
    %25 = vector.broadcast %2 : vector<1x128xf32> to vector<16x128xf32>
    %26 = arith.addf %24, %25 : vector<16x128xf32>
    %c0_9 = arith.constant 0 : index
    %c0_10 = arith.constant 0 : index
    %27 = vector.load %arg1[%c0_9, %c0_10] : memref<16x16xf32, #tpu.memory_space<vmem>>, vector<16x16xf32>
    %c0_11 = arith.constant 0 : index
    %c0_12 = arith.constant 0 : index
    %c0_13 = arith.constant 0 : index
    %28 = vector.load %arg3[%c0_11, %c0_12, %c0_13] : memref<2x128x384xf32, #tpu.memory_space<vmem>>, vector<1x128x384xf32>
    %29 = vector.shape_cast %28 : vector<1x128x384xf32> to vector<128x384xf32>
    %c0_14 = arith.constant 0 : index
    %c0_15 = arith.constant 0 : index
    %c0_16 = arith.constant 0 : index
    %30 = vector.load %arg4[%c0_14, %c0_15, %c0_16] : memref<2x128x128xf32, #tpu.memory_space<vmem>>, vector<1x128x128xf32>
    %31 = vector.shape_cast %30 : vector<1x128x128xf32> to vector<128x128xf32>
    %c0_17 = arith.constant 0 : index
    %c0_18 = arith.constant 0 : index
    %c0_19 = arith.constant 0 : index
    %32 = vector.load %arg5[%c0_17, %c0_18, %c0_19] : memref<2x128x128xf32, #tpu.memory_space<vmem>>, vector<1x128x128xf32>
    %33 = vector.shape_cast %32 : vector<1x128x128xf32> to vector<128x128xf32>
    %c0_20 = arith.constant 0 : index
    %c0_21 = arith.constant 0 : index
    %c0_22 = arith.constant 0 : index
    %34 = vector.load %arg6[%c0_20, %c0_21, %c0_22] : memref<2x128x128xf32, #tpu.memory_space<vmem>>, vector<1x128x128xf32>
    %35 = vector.shape_cast %34 : vector<1x128x128xf32> to vector<128x128xf32>
    %c0_23 = arith.constant 0 : index
    %c0_24 = arith.constant 0 : index
    %c0_25 = arith.constant 0 : index
    %36 = vector.load %arg7[%c0_23, %c0_24, %c0_25] : memref<2x10x128xf32, #tpu.memory_space<vmem>>, vector<1x10x128xf32>
    %37 = vector.shape_cast %36 : vector<1x10x128xf32> to vector<10x128xf32>
    %cst_26 = arith.constant dense<0.000000e+00> : vector<16x384xf32>
    %38 = tpu.matmul %26, %29, %cst_26 {dimension_numbers = #tpu.dot_dimension_numbers<[1], [0], [0], [1], [0, 0, 1, 1], [], []>} : vector<16x128xf32>, vector<128x384xf32>, vector<16x384xf32> -> vector<16x384xf32>
    %39 = vector.extract_strided_slice %38 {offsets = [0, 0], sizes = [16, 128], strides = [1, 1]} : vector<16x384xf32> to vector<16x128xf32>
    %40 = vector.extract_strided_slice %37 {offsets = [0, 0], sizes = [1, 128], strides = [1, 1]} : vector<10x128xf32> to vector<1x128xf32>
    %41 = vector.broadcast %40 : vector<1x128xf32> to vector<16x128xf32>
    %42 = arith.addf %39, %41 : vector<16x128xf32>
    %43 = vector.extract_strided_slice %38 {offsets = [0, 128], sizes = [16, 128], strides = [1, 1]} : vector<16x384xf32> to vector<16x128xf32>
    %44 = vector.extract_strided_slice %37 {offsets = [1, 0], sizes = [1, 128], strides = [1, 1]} : vector<10x128xf32> to vector<1x128xf32>
    %45 = vector.broadcast %44 : vector<1x128xf32> to vector<16x128xf32>
    %46 = arith.addf %43, %45 : vector<16x128xf32>
    %47 = vector.extract_strided_slice %38 {offsets = [0, 256], sizes = [16, 128], strides = [1, 1]} : vector<16x384xf32> to vector<16x128xf32>
    %48 = vector.extract_strided_slice %37 {offsets = [2, 0], sizes = [1, 128], strides = [1, 1]} : vector<10x128xf32> to vector<1x128xf32>
    %49 = vector.broadcast %48 : vector<1x128xf32> to vector<16x128xf32>
    %50 = arith.addf %47, %49 : vector<16x128xf32>
    %cst_27 = arith.constant 0.000000e+00 : f32
    %51 = vector.broadcast %cst_27 : f32 to vector<16x128xf32>
    %52 = vector.extract_strided_slice %42 {offsets = [0, 0], sizes = [16, 32], strides = [1, 1]} : vector<16x128xf32> to vector<16x32xf32>
    %53 = vector.extract_strided_slice %46 {offsets = [0, 0], sizes = [16, 32], strides = [1, 1]} : vector<16x128xf32> to vector<16x32xf32>
    %54 = vector.extract_strided_slice %50 {offsets = [0, 0], sizes = [16, 32], strides = [1, 1]} : vector<16x128xf32> to vector<16x32xf32>
    %55 = tpu.transpose %53, [1, 0] : vector<16x32xf32> -> vector<32x16xf32>
    %cst_28 = arith.constant dense<0.000000e+00> : vector<16x16xf32>
    %56 = tpu.matmul %52, %55, %cst_28 {dimension_numbers = #tpu.dot_dimension_numbers<[1], [0], [0], [1], [0, 0, 1, 1], [], []>} : vector<16x32xf32>, vector<32x16xf32>, vector<16x16xf32> -> vector<16x16xf32>
    %cst_29 = arith.constant 0.353553385 : f32
    %57 = vector.broadcast %cst_29 : f32 to vector<16x16xf32>
    %58 = arith.mulf %56, %57 : vector<16x16xf32>
    %59 = arith.addf %58, %27 : vector<16x16xf32>
    %cst_30 = arith.constant dense<0xFF800000> : vector<16xf32>
    %60 = vector.multi_reduction <maximumf>, %59, %cst_30 [1] : vector<16x16xf32> to vector<16xf32>
    %61 = vector.shape_cast %60 : vector<16xf32> to vector<16x1xf32>
    %62 = vector.broadcast %61 : vector<16x1xf32> to vector<16x16xf32>
    %63 = arith.subf %59, %62 : vector<16x16xf32>
    %64 = math.exp %63 : vector<16x16xf32>
    %cst_31 = arith.constant dense<0.000000e+00> : vector<16xf32>
    %65 = vector.multi_reduction <add>, %64, %cst_31 [1] : vector<16x16xf32> to vector<16xf32>
    %66 = vector.shape_cast %65 : vector<16xf32> to vector<16x1xf32>
    %67 = tpu.reciprocal %66 {approx = true} : vector<16x1xf32> -> vector<16x1xf32>
    %68 = vector.broadcast %67 : vector<16x1xf32> to vector<16x16xf32>
    %69 = arith.mulf %64, %68 : vector<16x16xf32>
    %cst_32 = arith.constant dense<0.000000e+00> : vector<16x32xf32>
    %70 = tpu.matmul %69, %54, %cst_32 {dimension_numbers = #tpu.dot_dimension_numbers<[1], [0], [0], [1], [0, 0, 1, 1], [], []>} : vector<16x16xf32>, vector<16x32xf32>, vector<16x32xf32> -> vector<16x32xf32>
    %71 = vector.extract_strided_slice %31 {offsets = [0, 0], sizes = [32, 128], strides = [1, 1]} : vector<128x128xf32> to vector<32x128xf32>
    %cst_33 = arith.constant dense<0.000000e+00> : vector<16x128xf32>
    %72 = tpu.matmul %70, %71, %cst_33 {dimension_numbers = #tpu.dot_dimension_numbers<[1], [0], [0], [1], [0, 0, 1, 1], [], []>} : vector<16x32xf32>, vector<32x128xf32>, vector<16x128xf32> -> vector<16x128xf32>
    %73 = arith.addf %51, %72 : vector<16x128xf32>
    %74 = vector.extract_strided_slice %42 {offsets = [0, 32], sizes = [16, 32], strides = [1, 1]} : vector<16x128xf32> to vector<16x32xf32>
    %75 = vector.extract_strided_slice %46 {offsets = [0, 32], sizes = [16, 32], strides = [1, 1]} : vector<16x128xf32> to vector<16x32xf32>
    %76 = vector.extract_strided_slice %50 {offsets = [0, 32], sizes = [16, 32], strides = [1, 1]} : vector<16x128xf32> to vector<16x32xf32>
    %77 = tpu.transpose %75, [1, 0] : vector<16x32xf32> -> vector<32x16xf32>
    %cst_34 = arith.constant dense<0.000000e+00> : vector<16x16xf32>
    %78 = tpu.matmul %74, %77, %cst_34 {dimension_numbers = #tpu.dot_dimension_numbers<[1], [0], [0], [1], [0, 0, 1, 1], [], []>} : vector<16x32xf32>, vector<32x16xf32>, vector<16x16xf32> -> vector<16x16xf32>
    %cst_35 = arith.constant 0.353553385 : f32
    %79 = vector.broadcast %cst_35 : f32 to vector<16x16xf32>
    %80 = arith.mulf %78, %79 : vector<16x16xf32>
    %81 = arith.addf %80, %27 : vector<16x16xf32>
    %cst_36 = arith.constant dense<0xFF800000> : vector<16xf32>
    %82 = vector.multi_reduction <maximumf>, %81, %cst_36 [1] : vector<16x16xf32> to vector<16xf32>
    %83 = vector.shape_cast %82 : vector<16xf32> to vector<16x1xf32>
    %84 = vector.broadcast %83 : vector<16x1xf32> to vector<16x16xf32>
    %85 = arith.subf %81, %84 : vector<16x16xf32>
    %86 = math.exp %85 : vector<16x16xf32>
    %cst_37 = arith.constant dense<0.000000e+00> : vector<16xf32>
    %87 = vector.multi_reduction <add>, %86, %cst_37 [1] : vector<16x16xf32> to vector<16xf32>
    %88 = vector.shape_cast %87 : vector<16xf32> to vector<16x1xf32>
    %89 = tpu.reciprocal %88 {approx = true} : vector<16x1xf32> -> vector<16x1xf32>
    %90 = vector.broadcast %89 : vector<16x1xf32> to vector<16x16xf32>
    %91 = arith.mulf %86, %90 : vector<16x16xf32>
    %cst_38 = arith.constant dense<0.000000e+00> : vector<16x32xf32>
    %92 = tpu.matmul %91, %76, %cst_38 {dimension_numbers = #tpu.dot_dimension_numbers<[1], [0], [0], [1], [0, 0, 1, 1], [], []>} : vector<16x16xf32>, vector<16x32xf32>, vector<16x32xf32> -> vector<16x32xf32>
    %93 = vector.extract_strided_slice %31 {offsets = [32, 0], sizes = [32, 128], strides = [1, 1]} : vector<128x128xf32> to vector<32x128xf32>
    %cst_39 = arith.constant dense<0.000000e+00> : vector<16x128xf32>
    %94 = tpu.matmul %92, %93, %cst_39 {dimension_numbers = #tpu.dot_dimension_numbers<[1], [0], [0], [1], [0, 0, 1, 1], [], []>} : vector<16x32xf32>, vector<32x128xf32>, vector<16x128xf32> -> vector<16x128xf32>
    %95 = arith.addf %73, %94 : vector<16x128xf32>
    %96 = vector.extract_strided_slice %42 {offsets = [0, 64], sizes = [16, 32], strides = [1, 1]} : vector<16x128xf32> to vector<16x32xf32>
    %97 = vector.extract_strided_slice %46 {offsets = [0, 64], sizes = [16, 32], strides = [1, 1]} : vector<16x128xf32> to vector<16x32xf32>
    %98 = vector.extract_strided_slice %50 {offsets = [0, 64], sizes = [16, 32], strides = [1, 1]} : vector<16x128xf32> to vector<16x32xf32>
    %99 = tpu.transpose %97, [1, 0] : vector<16x32xf32> -> vector<32x16xf32>
    %cst_40 = arith.constant dense<0.000000e+00> : vector<16x16xf32>
    %100 = tpu.matmul %96, %99, %cst_40 {dimension_numbers = #tpu.dot_dimension_numbers<[1], [0], [0], [1], [0, 0, 1, 1], [], []>} : vector<16x32xf32>, vector<32x16xf32>, vector<16x16xf32> -> vector<16x16xf32>
    %cst_41 = arith.constant 0.353553385 : f32
    %101 = vector.broadcast %cst_41 : f32 to vector<16x16xf32>
    %102 = arith.mulf %100, %101 : vector<16x16xf32>
    %103 = arith.addf %102, %27 : vector<16x16xf32>
    %cst_42 = arith.constant dense<0xFF800000> : vector<16xf32>
    %104 = vector.multi_reduction <maximumf>, %103, %cst_42 [1] : vector<16x16xf32> to vector<16xf32>
    %105 = vector.shape_cast %104 : vector<16xf32> to vector<16x1xf32>
    %106 = vector.broadcast %105 : vector<16x1xf32> to vector<16x16xf32>
    %107 = arith.subf %103, %106 : vector<16x16xf32>
    %108 = math.exp %107 : vector<16x16xf32>
    %cst_43 = arith.constant dense<0.000000e+00> : vector<16xf32>
    %109 = vector.multi_reduction <add>, %108, %cst_43 [1] : vector<16x16xf32> to vector<16xf32>
    %110 = vector.shape_cast %109 : vector<16xf32> to vector<16x1xf32>
    %111 = tpu.reciprocal %110 {approx = true} : vector<16x1xf32> -> vector<16x1xf32>
    %112 = vector.broadcast %111 : vector<16x1xf32> to vector<16x16xf32>
    %113 = arith.mulf %108, %112 : vector<16x16xf32>
    %cst_44 = arith.constant dense<0.000000e+00> : vector<16x32xf32>
    %114 = tpu.matmul %113, %98, %cst_44 {dimension_numbers = #tpu.dot_dimension_numbers<[1], [0], [0], [1], [0, 0, 1, 1], [], []>} : vector<16x16xf32>, vector<16x32xf32>, vector<16x32xf32> -> vector<16x32xf32>
    %115 = vector.extract_strided_slice %31 {offsets = [64, 0], sizes = [32, 128], strides = [1, 1]} : vector<128x128xf32> to vector<32x128xf32>
    %cst_45 = arith.constant dense<0.000000e+00> : vector<16x128xf32>
    %116 = tpu.matmul %114, %115, %cst_45 {dimension_numbers = #tpu.dot_dimension_numbers<[1], [0], [0], [1], [0, 0, 1, 1], [], []>} : vector<16x32xf32>, vector<32x128xf32>, vector<16x128xf32> -> vector<16x128xf32>
    %117 = arith.addf %95, %116 : vector<16x128xf32>
    %118 = vector.extract_strided_slice %42 {offsets = [0, 96], sizes = [16, 32], strides = [1, 1]} : vector<16x128xf32> to vector<16x32xf32>
    %119 = vector.extract_strided_slice %46 {offsets = [0, 96], sizes = [16, 32], strides = [1, 1]} : vector<16x128xf32> to vector<16x32xf32>
    %120 = vector.extract_strided_slice %50 {offsets = [0, 96], sizes = [16, 32], strides = [1, 1]} : vector<16x128xf32> to vector<16x32xf32>
    %121 = tpu.transpose %119, [1, 0] : vector<16x32xf32> -> vector<32x16xf32>
    %cst_46 = arith.constant dense<0.000000e+00> : vector<16x16xf32>
    %122 = tpu.matmul %118, %121, %cst_46 {dimension_numbers = #tpu.dot_dimension_numbers<[1], [0], [0], [1], [0, 0, 1, 1], [], []>} : vector<16x32xf32>, vector<32x16xf32>, vector<16x16xf32> -> vector<16x16xf32>
    %cst_47 = arith.constant 0.353553385 : f32
    %123 = vector.broadcast %cst_47 : f32 to vector<16x16xf32>
    %124 = arith.mulf %122, %123 : vector<16x16xf32>
    %125 = arith.addf %124, %27 : vector<16x16xf32>
    %cst_48 = arith.constant dense<0xFF800000> : vector<16xf32>
    %126 = vector.multi_reduction <maximumf>, %125, %cst_48 [1] : vector<16x16xf32> to vector<16xf32>
    %127 = vector.shape_cast %126 : vector<16xf32> to vector<16x1xf32>
    %128 = vector.broadcast %127 : vector<16x1xf32> to vector<16x16xf32>
    %129 = arith.subf %125, %128 : vector<16x16xf32>
    %130 = math.exp %129 : vector<16x16xf32>
    %cst_49 = arith.constant dense<0.000000e+00> : vector<16xf32>
    %131 = vector.multi_reduction <add>, %130, %cst_49 [1] : vector<16x16xf32> to vector<16xf32>
    %132 = vector.shape_cast %131 : vector<16xf32> to vector<16x1xf32>
    %133 = tpu.reciprocal %132 {approx = true} : vector<16x1xf32> -> vector<16x1xf32>
    %134 = vector.broadcast %133 : vector<16x1xf32> to vector<16x16xf32>
    %135 = arith.mulf %130, %134 : vector<16x16xf32>
    %cst_50 = arith.constant dense<0.000000e+00> : vector<16x32xf32>
    %136 = tpu.matmul %135, %120, %cst_50 {dimension_numbers = #tpu.dot_dimension_numbers<[1], [0], [0], [1], [0, 0, 1, 1], [], []>} : vector<16x16xf32>, vector<16x32xf32>, vector<16x32xf32> -> vector<16x32xf32>
    %137 = vector.extract_strided_slice %31 {offsets = [96, 0], sizes = [32, 128], strides = [1, 1]} : vector<128x128xf32> to vector<32x128xf32>
    %cst_51 = arith.constant dense<0.000000e+00> : vector<16x128xf32>
    %138 = tpu.matmul %136, %137, %cst_51 {dimension_numbers = #tpu.dot_dimension_numbers<[1], [0], [0], [1], [0, 0, 1, 1], [], []>} : vector<16x32xf32>, vector<32x128xf32>, vector<16x128xf32> -> vector<16x128xf32>
    %139 = arith.addf %117, %138 : vector<16x128xf32>
    %140 = vector.extract_strided_slice %37 {offsets = [3, 0], sizes = [1, 128], strides = [1, 1]} : vector<10x128xf32> to vector<1x128xf32>
    %141 = vector.broadcast %140 : vector<1x128xf32> to vector<16x128xf32>
    %142 = arith.addf %139, %141 : vector<16x128xf32>
    %143 = arith.addf %26, %142 : vector<16x128xf32>
    %144 = vector.extract_strided_slice %37 {offsets = [6, 0], sizes = [1, 128], strides = [1, 1]} : vector<10x128xf32> to vector<1x128xf32>
    %145 = vector.extract_strided_slice %37 {offsets = [7, 0], sizes = [1, 128], strides = [1, 1]} : vector<10x128xf32> to vector<1x128xf32>
    %cst_52 = arith.constant dense<0.000000e+00> : vector<16xf32>
    %146 = vector.multi_reduction <add>, %143, %cst_52 [1] : vector<16x128xf32> to vector<16xf32>
    %147 = vector.shape_cast %146 : vector<16xf32> to vector<16x1xf32>
    %cst_53 = arith.constant 3.125000e-02 : f32
    %148 = vector.broadcast %cst_53 : f32 to vector<16x1xf32>
    %149 = arith.mulf %147, %148 : vector<16x1xf32>
    %150 = arith.mulf %143, %143 : vector<16x128xf32>
    %cst_54 = arith.constant dense<0.000000e+00> : vector<16xf32>
    %151 = vector.multi_reduction <add>, %150, %cst_54 [1] : vector<16x128xf32> to vector<16xf32>
    %152 = vector.shape_cast %151 : vector<16xf32> to vector<16x1xf32>
    %cst_55 = arith.constant 3.125000e-02 : f32
    %153 = vector.broadcast %cst_55 : f32 to vector<16x1xf32>
    %154 = arith.mulf %152, %153 : vector<16x1xf32>
    %155 = arith.mulf %149, %149 : vector<16x1xf32>
    %156 = arith.subf %154, %155 : vector<16x1xf32>
    %cst_56 = arith.constant 0.000000e+00 : f32
    %157 = vector.broadcast %cst_56 : f32 to vector<16x1xf32>
    %158 = arith.maximumf %156, %157 : vector<16x1xf32>
    %159 = vector.broadcast %149 : vector<16x1xf32> to vector<16x128xf32>
    %160 = arith.subf %143, %159 : vector<16x128xf32>
    %cst_57 = arith.constant 9.99999996E-13 : f32
    %161 = vector.broadcast %cst_57 : f32 to vector<16x1xf32>
    %162 = arith.addf %158, %161 : vector<16x1xf32>
    %163 = math.rsqrt %162 : vector<16x1xf32>
    %164 = vector.broadcast %163 : vector<16x1xf32> to vector<16x128xf32>
    %165 = arith.mulf %160, %164 : vector<16x128xf32>
    %166 = vector.broadcast %144 : vector<1x128xf32> to vector<16x128xf32>
    %167 = arith.mulf %165, %166 : vector<16x128xf32>
    %168 = vector.broadcast %145 : vector<1x128xf32> to vector<16x128xf32>
    %169 = arith.addf %167, %168 : vector<16x128xf32>
    %cst_58 = arith.constant dense<0.000000e+00> : vector<16x128xf32>
    %170 = tpu.matmul %169, %33, %cst_58 {dimension_numbers = #tpu.dot_dimension_numbers<[1], [0], [0], [1], [0, 0, 1, 1], [], []>} : vector<16x128xf32>, vector<128x128xf32>, vector<16x128xf32> -> vector<16x128xf32>
    %171 = vector.extract_strided_slice %37 {offsets = [4, 0], sizes = [1, 128], strides = [1, 1]} : vector<10x128xf32> to vector<1x128xf32>
    %172 = vector.broadcast %171 : vector<1x128xf32> to vector<16x128xf32>
    %173 = arith.addf %170, %172 : vector<16x128xf32>
    %174 = arith.mulf %173, %173 : vector<16x128xf32>
    %175 = arith.mulf %173, %174 : vector<16x128xf32>
    %cst_59 = arith.constant 4.471500e-02 : f32
    %176 = vector.broadcast %cst_59 : f32 to vector<16x128xf32>
    %177 = arith.mulf %176, %175 : vector<16x128xf32>
    %178 = arith.addf %173, %177 : vector<16x128xf32>
    %cst_60 = arith.constant 0.797884583 : f32
    %179 = vector.broadcast %cst_60 : f32 to vector<16x128xf32>
    %180 = arith.mulf %179, %178 : vector<16x128xf32>
    %181 = math.tanh %180 : vector<16x128xf32>
    %cst_61 = arith.constant 1.000000e+00 : f32
    %182 = vector.broadcast %cst_61 : f32 to vector<16x128xf32>
    %183 = arith.addf %182, %181 : vector<16x128xf32>
    %cst_62 = arith.constant 5.000000e-01 : f32
    %184 = vector.broadcast %cst_62 : f32 to vector<16x128xf32>
    %185 = arith.mulf %184, %183 : vector<16x128xf32>
    %186 = arith.mulf %173, %185 : vector<16x128xf32>
    %cst_63 = arith.constant dense<0.000000e+00> : vector<16x128xf32>
    %187 = tpu.matmul %186, %35, %cst_63 {dimension_numbers = #tpu.dot_dimension_numbers<[1], [0], [0], [1], [0, 0, 1, 1], [], []>} : vector<16x128xf32>, vector<128x128xf32>, vector<16x128xf32> -> vector<16x128xf32>
    %188 = vector.extract_strided_slice %37 {offsets = [5, 0], sizes = [1, 128], strides = [1, 1]} : vector<10x128xf32> to vector<1x128xf32>
    %189 = vector.broadcast %188 : vector<1x128xf32> to vector<16x128xf32>
    %190 = arith.addf %187, %189 : vector<16x128xf32>
    %191 = arith.addf %169, %190 : vector<16x128xf32>
    %192 = vector.extract_strided_slice %37 {offsets = [8, 0], sizes = [1, 128], strides = [1, 1]} : vector<10x128xf32> to vector<1x128xf32>
    %193 = vector.extract_strided_slice %37 {offsets = [9, 0], sizes = [1, 128], strides = [1, 1]} : vector<10x128xf32> to vector<1x128xf32>
    %cst_64 = arith.constant dense<0.000000e+00> : vector<16xf32>
    %194 = vector.multi_reduction <add>, %191, %cst_64 [1] : vector<16x128xf32> to vector<16xf32>
    %195 = vector.shape_cast %194 : vector<16xf32> to vector<16x1xf32>
    %cst_65 = arith.constant 3.125000e-02 : f32
    %196 = vector.broadcast %cst_65 : f32 to vector<16x1xf32>
    %197 = arith.mulf %195, %196 : vector<16x1xf32>
    %198 = arith.mulf %191, %191 : vector<16x128xf32>
    %cst_66 = arith.constant dense<0.000000e+00> : vector<16xf32>
    %199 = vector.multi_reduction <add>, %198, %cst_66 [1] : vector<16x128xf32> to vector<16xf32>
    %200 = vector.shape_cast %199 : vector<16xf32> to vector<16x1xf32>
    %cst_67 = arith.constant 3.125000e-02 : f32
    %201 = vector.broadcast %cst_67 : f32 to vector<16x1xf32>
    %202 = arith.mulf %200, %201 : vector<16x1xf32>
    %203 = arith.mulf %197, %197 : vector<16x1xf32>
    %204 = arith.subf %202, %203 : vector<16x1xf32>
    %cst_68 = arith.constant 0.000000e+00 : f32
    %205 = vector.broadcast %cst_68 : f32 to vector<16x1xf32>
    %206 = arith.maximumf %204, %205 : vector<16x1xf32>
    %207 = vector.broadcast %197 : vector<16x1xf32> to vector<16x128xf32>
    %208 = arith.subf %191, %207 : vector<16x128xf32>
    %cst_69 = arith.constant 9.99999996E-13 : f32
    %209 = vector.broadcast %cst_69 : f32 to vector<16x1xf32>
    %210 = arith.addf %206, %209 : vector<16x1xf32>
    %211 = math.rsqrt %210 : vector<16x1xf32>
    %212 = vector.broadcast %211 : vector<16x1xf32> to vector<16x128xf32>
    %213 = arith.mulf %208, %212 : vector<16x128xf32>
    %214 = vector.broadcast %192 : vector<1x128xf32> to vector<16x128xf32>
    %215 = arith.mulf %213, %214 : vector<16x128xf32>
    %216 = vector.broadcast %193 : vector<1x128xf32> to vector<16x128xf32>
    %217 = arith.addf %215, %216 : vector<16x128xf32>
    %c1_70 = arith.constant 1 : index
    %c0_71 = arith.constant 0 : index
    %c0_72 = arith.constant 0 : index
    %218 = vector.load %arg3[%c1_70, %c0_71, %c0_72] : memref<2x128x384xf32, #tpu.memory_space<vmem>>, vector<1x128x384xf32>
    %219 = vector.shape_cast %218 : vector<1x128x384xf32> to vector<128x384xf32>
    %c1_73 = arith.constant 1 : index
    %c0_74 = arith.constant 0 : index
    %c0_75 = arith.constant 0 : index
    %220 = vector.load %arg4[%c1_73, %c0_74, %c0_75] : memref<2x128x128xf32, #tpu.memory_space<vmem>>, vector<1x128x128xf32>
    %221 = vector.shape_cast %220 : vector<1x128x128xf32> to vector<128x128xf32>
    %c1_76 = arith.constant 1 : index
    %c0_77 = arith.constant 0 : index
    %c0_78 = arith.constant 0 : index
    %222 = vector.load %arg5[%c1_76, %c0_77, %c0_78] : memref<2x128x128xf32, #tpu.memory_space<vmem>>, vector<1x128x128xf32>
    %223 = vector.shape_cast %222 : vector<1x128x128xf32> to vector<128x128xf32>
    %c1_79 = arith.constant 1 : index
    %c0_80 = arith.constant 0 : index
    %c0_81 = arith.constant 0 : index
    %224 = vector.load %arg6[%c1_79, %c0_80, %c0_81] : memref<2x128x128xf32, #tpu.memory_space<vmem>>, vector<1x128x128xf32>
    %225 = vector.shape_cast %224 : vector<1x128x128xf32> to vector<128x128xf32>
    %c1_82 = arith.constant 1 : index
    %c0_83 = arith.constant 0 : index
    %c0_84 = arith.constant 0 : index
    %226 = vector.load %arg7[%c1_82, %c0_83, %c0_84] : memref<2x10x128xf32, #tpu.memory_space<vmem>>, vector<1x10x128xf32>
    %227 = vector.shape_cast %226 : vector<1x10x128xf32> to vector<10x128xf32>
    %cst_85 = arith.constant dense<0.000000e+00> : vector<16x384xf32>
    %228 = tpu.matmul %217, %219, %cst_85 {dimension_numbers = #tpu.dot_dimension_numbers<[1], [0], [0], [1], [0, 0, 1, 1], [], []>} : vector<16x128xf32>, vector<128x384xf32>, vector<16x384xf32> -> vector<16x384xf32>
    %229 = vector.extract_strided_slice %228 {offsets = [0, 0], sizes = [16, 128], strides = [1, 1]} : vector<16x384xf32> to vector<16x128xf32>
    %230 = vector.extract_strided_slice %227 {offsets = [0, 0], sizes = [1, 128], strides = [1, 1]} : vector<10x128xf32> to vector<1x128xf32>
    %231 = vector.broadcast %230 : vector<1x128xf32> to vector<16x128xf32>
    %232 = arith.addf %229, %231 : vector<16x128xf32>
    %233 = vector.extract_strided_slice %228 {offsets = [0, 128], sizes = [16, 128], strides = [1, 1]} : vector<16x384xf32> to vector<16x128xf32>
    %234 = vector.extract_strided_slice %227 {offsets = [1, 0], sizes = [1, 128], strides = [1, 1]} : vector<10x128xf32> to vector<1x128xf32>
    %235 = vector.broadcast %234 : vector<1x128xf32> to vector<16x128xf32>
    %236 = arith.addf %233, %235 : vector<16x128xf32>
    %237 = vector.extract_strided_slice %228 {offsets = [0, 256], sizes = [16, 128], strides = [1, 1]} : vector<16x384xf32> to vector<16x128xf32>
    %238 = vector.extract_strided_slice %227 {offsets = [2, 0], sizes = [1, 128], strides = [1, 1]} : vector<10x128xf32> to vector<1x128xf32>
    %239 = vector.broadcast %238 : vector<1x128xf32> to vector<16x128xf32>
    %240 = arith.addf %237, %239 : vector<16x128xf32>
    %cst_86 = arith.constant 0.000000e+00 : f32
    %241 = vector.broadcast %cst_86 : f32 to vector<16x128xf32>
    %242 = vector.extract_strided_slice %232 {offsets = [0, 0], sizes = [16, 32], strides = [1, 1]} : vector<16x128xf32> to vector<16x32xf32>
    %243 = vector.extract_strided_slice %236 {offsets = [0, 0], sizes = [16, 32], strides = [1, 1]} : vector<16x128xf32> to vector<16x32xf32>
    %244 = vector.extract_strided_slice %240 {offsets = [0, 0], sizes = [16, 32], strides = [1, 1]} : vector<16x128xf32> to vector<16x32xf32>
    %245 = tpu.transpose %243, [1, 0] : vector<16x32xf32> -> vector<32x16xf32>
    %cst_87 = arith.constant dense<0.000000e+00> : vector<16x16xf32>
    %246 = tpu.matmul %242, %245, %cst_87 {dimension_numbers = #tpu.dot_dimension_numbers<[1], [0], [0], [1], [0, 0, 1, 1], [], []>} : vector<16x32xf32>, vector<32x16xf32>, vector<16x16xf32> -> vector<16x16xf32>
    %cst_88 = arith.constant 0.353553385 : f32
    %247 = vector.broadcast %cst_88 : f32 to vector<16x16xf32>
    %248 = arith.mulf %246, %247 : vector<16x16xf32>
    %249 = arith.addf %248, %27 : vector<16x16xf32>
    %cst_89 = arith.constant dense<0xFF800000> : vector<16xf32>
    %250 = vector.multi_reduction <maximumf>, %249, %cst_89 [1] : vector<16x16xf32> to vector<16xf32>
    %251 = vector.shape_cast %250 : vector<16xf32> to vector<16x1xf32>
    %252 = vector.broadcast %251 : vector<16x1xf32> to vector<16x16xf32>
    %253 = arith.subf %249, %252 : vector<16x16xf32>
    %254 = math.exp %253 : vector<16x16xf32>
    %cst_90 = arith.constant dense<0.000000e+00> : vector<16xf32>
    %255 = vector.multi_reduction <add>, %254, %cst_90 [1] : vector<16x16xf32> to vector<16xf32>
    %256 = vector.shape_cast %255 : vector<16xf32> to vector<16x1xf32>
    %257 = tpu.reciprocal %256 {approx = true} : vector<16x1xf32> -> vector<16x1xf32>
    %258 = vector.broadcast %257 : vector<16x1xf32> to vector<16x16xf32>
    %259 = arith.mulf %254, %258 : vector<16x16xf32>
    %cst_91 = arith.constant dense<0.000000e+00> : vector<16x32xf32>
    %260 = tpu.matmul %259, %244, %cst_91 {dimension_numbers = #tpu.dot_dimension_numbers<[1], [0], [0], [1], [0, 0, 1, 1], [], []>} : vector<16x16xf32>, vector<16x32xf32>, vector<16x32xf32> -> vector<16x32xf32>
    %261 = vector.extract_strided_slice %221 {offsets = [0, 0], sizes = [32, 128], strides = [1, 1]} : vector<128x128xf32> to vector<32x128xf32>
    %cst_92 = arith.constant dense<0.000000e+00> : vector<16x128xf32>
    %262 = tpu.matmul %260, %261, %cst_92 {dimension_numbers = #tpu.dot_dimension_numbers<[1], [0], [0], [1], [0, 0, 1, 1], [], []>} : vector<16x32xf32>, vector<32x128xf32>, vector<16x128xf32> -> vector<16x128xf32>
    %263 = arith.addf %241, %262 : vector<16x128xf32>
    %264 = vector.extract_strided_slice %232 {offsets = [0, 32], sizes = [16, 32], strides = [1, 1]} : vector<16x128xf32> to vector<16x32xf32>
    %265 = vector.extract_strided_slice %236 {offsets = [0, 32], sizes = [16, 32], strides = [1, 1]} : vector<16x128xf32> to vector<16x32xf32>
    %266 = vector.extract_strided_slice %240 {offsets = [0, 32], sizes = [16, 32], strides = [1, 1]} : vector<16x128xf32> to vector<16x32xf32>
    %267 = tpu.transpose %265, [1, 0] : vector<16x32xf32> -> vector<32x16xf32>
    %cst_93 = arith.constant dense<0.000000e+00> : vector<16x16xf32>
    %268 = tpu.matmul %264, %267, %cst_93 {dimension_numbers = #tpu.dot_dimension_numbers<[1], [0], [0], [1], [0, 0, 1, 1], [], []>} : vector<16x32xf32>, vector<32x16xf32>, vector<16x16xf32> -> vector<16x16xf32>
    %cst_94 = arith.constant 0.353553385 : f32
    %269 = vector.broadcast %cst_94 : f32 to vector<16x16xf32>
    %270 = arith.mulf %268, %269 : vector<16x16xf32>
    %271 = arith.addf %270, %27 : vector<16x16xf32>
    %cst_95 = arith.constant dense<0xFF800000> : vector<16xf32>
    %272 = vector.multi_reduction <maximumf>, %271, %cst_95 [1] : vector<16x16xf32> to vector<16xf32>
    %273 = vector.shape_cast %272 : vector<16xf32> to vector<16x1xf32>
    %274 = vector.broadcast %273 : vector<16x1xf32> to vector<16x16xf32>
    %275 = arith.subf %271, %274 : vector<16x16xf32>
    %276 = math.exp %275 : vector<16x16xf32>
    %cst_96 = arith.constant dense<0.000000e+00> : vector<16xf32>
    %277 = vector.multi_reduction <add>, %276, %cst_96 [1] : vector<16x16xf32> to vector<16xf32>
    %278 = vector.shape_cast %277 : vector<16xf32> to vector<16x1xf32>
    %279 = tpu.reciprocal %278 {approx = true} : vector<16x1xf32> -> vector<16x1xf32>
    %280 = vector.broadcast %279 : vector<16x1xf32> to vector<16x16xf32>
    %281 = arith.mulf %276, %280 : vector<16x16xf32>
    %cst_97 = arith.constant dense<0.000000e+00> : vector<16x32xf32>
    %282 = tpu.matmul %281, %266, %cst_97 {dimension_numbers = #tpu.dot_dimension_numbers<[1], [0], [0], [1], [0, 0, 1, 1], [], []>} : vector<16x16xf32>, vector<16x32xf32>, vector<16x32xf32> -> vector<16x32xf32>
    %283 = vector.extract_strided_slice %221 {offsets = [32, 0], sizes = [32, 128], strides = [1, 1]} : vector<128x128xf32> to vector<32x128xf32>
    %cst_98 = arith.constant dense<0.000000e+00> : vector<16x128xf32>
    %284 = tpu.matmul %282, %283, %cst_98 {dimension_numbers = #tpu.dot_dimension_numbers<[1], [0], [0], [1], [0, 0, 1, 1], [], []>} : vector<16x32xf32>, vector<32x128xf32>, vector<16x128xf32> -> vector<16x128xf32>
    %285 = arith.addf %263, %284 : vector<16x128xf32>
    %286 = vector.extract_strided_slice %232 {offsets = [0, 64], sizes = [16, 32], strides = [1, 1]} : vector<16x128xf32> to vector<16x32xf32>
    %287 = vector.extract_strided_slice %236 {offsets = [0, 64], sizes = [16, 32], strides = [1, 1]} : vector<16x128xf32> to vector<16x32xf32>
    %288 = vector.extract_strided_slice %240 {offsets = [0, 64], sizes = [16, 32], strides = [1, 1]} : vector<16x128xf32> to vector<16x32xf32>
    %289 = tpu.transpose %287, [1, 0] : vector<16x32xf32> -> vector<32x16xf32>
    %cst_99 = arith.constant dense<0.000000e+00> : vector<16x16xf32>
    %290 = tpu.matmul %286, %289, %cst_99 {dimension_numbers = #tpu.dot_dimension_numbers<[1], [0], [0], [1], [0, 0, 1, 1], [], []>} : vector<16x32xf32>, vector<32x16xf32>, vector<16x16xf32> -> vector<16x16xf32>
    %cst_100 = arith.constant 0.353553385 : f32
    %291 = vector.broadcast %cst_100 : f32 to vector<16x16xf32>
    %292 = arith.mulf %290, %291 : vector<16x16xf32>
    %293 = arith.addf %292, %27 : vector<16x16xf32>
    %cst_101 = arith.constant dense<0xFF800000> : vector<16xf32>
    %294 = vector.multi_reduction <maximumf>, %293, %cst_101 [1] : vector<16x16xf32> to vector<16xf32>
    %295 = vector.shape_cast %294 : vector<16xf32> to vector<16x1xf32>
    %296 = vector.broadcast %295 : vector<16x1xf32> to vector<16x16xf32>
    %297 = arith.subf %293, %296 : vector<16x16xf32>
    %298 = math.exp %297 : vector<16x16xf32>
    %cst_102 = arith.constant dense<0.000000e+00> : vector<16xf32>
    %299 = vector.multi_reduction <add>, %298, %cst_102 [1] : vector<16x16xf32> to vector<16xf32>
    %300 = vector.shape_cast %299 : vector<16xf32> to vector<16x1xf32>
    %301 = tpu.reciprocal %300 {approx = true} : vector<16x1xf32> -> vector<16x1xf32>
    %302 = vector.broadcast %301 : vector<16x1xf32> to vector<16x16xf32>
    %303 = arith.mulf %298, %302 : vector<16x16xf32>
    %cst_103 = arith.constant dense<0.000000e+00> : vector<16x32xf32>
    %304 = tpu.matmul %303, %288, %cst_103 {dimension_numbers = #tpu.dot_dimension_numbers<[1], [0], [0], [1], [0, 0, 1, 1], [], []>} : vector<16x16xf32>, vector<16x32xf32>, vector<16x32xf32> -> vector<16x32xf32>
    %305 = vector.extract_strided_slice %221 {offsets = [64, 0], sizes = [32, 128], strides = [1, 1]} : vector<128x128xf32> to vector<32x128xf32>
    %cst_104 = arith.constant dense<0.000000e+00> : vector<16x128xf32>
    %306 = tpu.matmul %304, %305, %cst_104 {dimension_numbers = #tpu.dot_dimension_numbers<[1], [0], [0], [1], [0, 0, 1, 1], [], []>} : vector<16x32xf32>, vector<32x128xf32>, vector<16x128xf32> -> vector<16x128xf32>
    %307 = arith.addf %285, %306 : vector<16x128xf32>
    %308 = vector.extract_strided_slice %232 {offsets = [0, 96], sizes = [16, 32], strides = [1, 1]} : vector<16x128xf32> to vector<16x32xf32>
    %309 = vector.extract_strided_slice %236 {offsets = [0, 96], sizes = [16, 32], strides = [1, 1]} : vector<16x128xf32> to vector<16x32xf32>
    %310 = vector.extract_strided_slice %240 {offsets = [0, 96], sizes = [16, 32], strides = [1, 1]} : vector<16x128xf32> to vector<16x32xf32>
    %311 = tpu.transpose %309, [1, 0] : vector<16x32xf32> -> vector<32x16xf32>
    %cst_105 = arith.constant dense<0.000000e+00> : vector<16x16xf32>
    %312 = tpu.matmul %308, %311, %cst_105 {dimension_numbers = #tpu.dot_dimension_numbers<[1], [0], [0], [1], [0, 0, 1, 1], [], []>} : vector<16x32xf32>, vector<32x16xf32>, vector<16x16xf32> -> vector<16x16xf32>
    %cst_106 = arith.constant 0.353553385 : f32
    %313 = vector.broadcast %cst_106 : f32 to vector<16x16xf32>
    %314 = arith.mulf %312, %313 : vector<16x16xf32>
    %315 = arith.addf %314, %27 : vector<16x16xf32>
    %cst_107 = arith.constant dense<0xFF800000> : vector<16xf32>
    %316 = vector.multi_reduction <maximumf>, %315, %cst_107 [1] : vector<16x16xf32> to vector<16xf32>
    %317 = vector.shape_cast %316 : vector<16xf32> to vector<16x1xf32>
    %318 = vector.broadcast %317 : vector<16x1xf32> to vector<16x16xf32>
    %319 = arith.subf %315, %318 : vector<16x16xf32>
    %320 = math.exp %319 : vector<16x16xf32>
    %cst_108 = arith.constant dense<0.000000e+00> : vector<16xf32>
    %321 = vector.multi_reduction <add>, %320, %cst_108 [1] : vector<16x16xf32> to vector<16xf32>
    %322 = vector.shape_cast %321 : vector<16xf32> to vector<16x1xf32>
    %323 = tpu.reciprocal %322 {approx = true} : vector<16x1xf32> -> vector<16x1xf32>
    %324 = vector.broadcast %323 : vector<16x1xf32> to vector<16x16xf32>
    %325 = arith.mulf %320, %324 : vector<16x16xf32>
    %cst_109 = arith.constant dense<0.000000e+00> : vector<16x32xf32>
    %326 = tpu.matmul %325, %310, %cst_109 {dimension_numbers = #tpu.dot_dimension_numbers<[1], [0], [0], [1], [0, 0, 1, 1], [], []>} : vector<16x16xf32>, vector<16x32xf32>, vector<16x32xf32> -> vector<16x32xf32>
    %327 = vector.extract_strided_slice %221 {offsets = [96, 0], sizes = [32, 128], strides = [1, 1]} : vector<128x128xf32> to vector<32x128xf32>
    %cst_110 = arith.constant dense<0.000000e+00> : vector<16x128xf32>
    %328 = tpu.matmul %326, %327, %cst_110 {dimension_numbers = #tpu.dot_dimension_numbers<[1], [0], [0], [1], [0, 0, 1, 1], [], []>} : vector<16x32xf32>, vector<32x128xf32>, vector<16x128xf32> -> vector<16x128xf32>
    %329 = arith.addf %307, %328 : vector<16x128xf32>
    %330 = vector.extract_strided_slice %227 {offsets = [3, 0], sizes = [1, 128], strides = [1, 1]} : vector<10x128xf32> to vector<1x128xf32>
    %331 = vector.broadcast %330 : vector<1x128xf32> to vector<16x128xf32>
    %332 = arith.addf %329, %331 : vector<16x128xf32>
    %333 = arith.addf %217, %332 : vector<16x128xf32>
    %334 = vector.extract_strided_slice %227 {offsets = [6, 0], sizes = [1, 128], strides = [1, 1]} : vector<10x128xf32> to vector<1x128xf32>
    %335 = vector.extract_strided_slice %227 {offsets = [7, 0], sizes = [1, 128], strides = [1, 1]} : vector<10x128xf32> to vector<1x128xf32>
    %cst_111 = arith.constant dense<0.000000e+00> : vector<16xf32>
    %336 = vector.multi_reduction <add>, %333, %cst_111 [1] : vector<16x128xf32> to vector<16xf32>
    %337 = vector.shape_cast %336 : vector<16xf32> to vector<16x1xf32>
    %cst_112 = arith.constant 3.125000e-02 : f32
    %338 = vector.broadcast %cst_112 : f32 to vector<16x1xf32>
    %339 = arith.mulf %337, %338 : vector<16x1xf32>
    %340 = arith.mulf %333, %333 : vector<16x128xf32>
    %cst_113 = arith.constant dense<0.000000e+00> : vector<16xf32>
    %341 = vector.multi_reduction <add>, %340, %cst_113 [1] : vector<16x128xf32> to vector<16xf32>
    %342 = vector.shape_cast %341 : vector<16xf32> to vector<16x1xf32>
    %cst_114 = arith.constant 3.125000e-02 : f32
    %343 = vector.broadcast %cst_114 : f32 to vector<16x1xf32>
    %344 = arith.mulf %342, %343 : vector<16x1xf32>
    %345 = arith.mulf %339, %339 : vector<16x1xf32>
    %346 = arith.subf %344, %345 : vector<16x1xf32>
    %cst_115 = arith.constant 0.000000e+00 : f32
    %347 = vector.broadcast %cst_115 : f32 to vector<16x1xf32>
    %348 = arith.maximumf %346, %347 : vector<16x1xf32>
    %349 = vector.broadcast %339 : vector<16x1xf32> to vector<16x128xf32>
    %350 = arith.subf %333, %349 : vector<16x128xf32>
    %cst_116 = arith.constant 9.99999996E-13 : f32
    %351 = vector.broadcast %cst_116 : f32 to vector<16x1xf32>
    %352 = arith.addf %348, %351 : vector<16x1xf32>
    %353 = math.rsqrt %352 : vector<16x1xf32>
    %354 = vector.broadcast %353 : vector<16x1xf32> to vector<16x128xf32>
    %355 = arith.mulf %350, %354 : vector<16x128xf32>
    %356 = vector.broadcast %334 : vector<1x128xf32> to vector<16x128xf32>
    %357 = arith.mulf %355, %356 : vector<16x128xf32>
    %358 = vector.broadcast %335 : vector<1x128xf32> to vector<16x128xf32>
    %359 = arith.addf %357, %358 : vector<16x128xf32>
    %cst_117 = arith.constant dense<0.000000e+00> : vector<16x128xf32>
    %360 = tpu.matmul %359, %223, %cst_117 {dimension_numbers = #tpu.dot_dimension_numbers<[1], [0], [0], [1], [0, 0, 1, 1], [], []>} : vector<16x128xf32>, vector<128x128xf32>, vector<16x128xf32> -> vector<16x128xf32>
    %361 = vector.extract_strided_slice %227 {offsets = [4, 0], sizes = [1, 128], strides = [1, 1]} : vector<10x128xf32> to vector<1x128xf32>
    %362 = vector.broadcast %361 : vector<1x128xf32> to vector<16x128xf32>
    %363 = arith.addf %360, %362 : vector<16x128xf32>
    %364 = arith.mulf %363, %363 : vector<16x128xf32>
    %365 = arith.mulf %363, %364 : vector<16x128xf32>
    %cst_118 = arith.constant 4.471500e-02 : f32
    %366 = vector.broadcast %cst_118 : f32 to vector<16x128xf32>
    %367 = arith.mulf %366, %365 : vector<16x128xf32>
    %368 = arith.addf %363, %367 : vector<16x128xf32>
    %cst_119 = arith.constant 0.797884583 : f32
    %369 = vector.broadcast %cst_119 : f32 to vector<16x128xf32>
    %370 = arith.mulf %369, %368 : vector<16x128xf32>
    %371 = math.tanh %370 : vector<16x128xf32>
    %cst_120 = arith.constant 1.000000e+00 : f32
    %372 = vector.broadcast %cst_120 : f32 to vector<16x128xf32>
    %373 = arith.addf %372, %371 : vector<16x128xf32>
    %cst_121 = arith.constant 5.000000e-01 : f32
    %374 = vector.broadcast %cst_121 : f32 to vector<16x128xf32>
    %375 = arith.mulf %374, %373 : vector<16x128xf32>
    %376 = arith.mulf %363, %375 : vector<16x128xf32>
    %cst_122 = arith.constant dense<0.000000e+00> : vector<16x128xf32>
    %377 = tpu.matmul %376, %225, %cst_122 {dimension_numbers = #tpu.dot_dimension_numbers<[1], [0], [0], [1], [0, 0, 1, 1], [], []>} : vector<16x128xf32>, vector<128x128xf32>, vector<16x128xf32> -> vector<16x128xf32>
    %378 = vector.extract_strided_slice %227 {offsets = [5, 0], sizes = [1, 128], strides = [1, 1]} : vector<10x128xf32> to vector<1x128xf32>
    %379 = vector.broadcast %378 : vector<1x128xf32> to vector<16x128xf32>
    %380 = arith.addf %377, %379 : vector<16x128xf32>
    %381 = arith.addf %359, %380 : vector<16x128xf32>
    %382 = vector.extract_strided_slice %227 {offsets = [8, 0], sizes = [1, 128], strides = [1, 1]} : vector<10x128xf32> to vector<1x128xf32>
    %383 = vector.extract_strided_slice %227 {offsets = [9, 0], sizes = [1, 128], strides = [1, 1]} : vector<10x128xf32> to vector<1x128xf32>
    %cst_123 = arith.constant dense<0.000000e+00> : vector<16xf32>
    %384 = vector.multi_reduction <add>, %381, %cst_123 [1] : vector<16x128xf32> to vector<16xf32>
    %385 = vector.shape_cast %384 : vector<16xf32> to vector<16x1xf32>
    %cst_124 = arith.constant 3.125000e-02 : f32
    %386 = vector.broadcast %cst_124 : f32 to vector<16x1xf32>
    %387 = arith.mulf %385, %386 : vector<16x1xf32>
    %388 = arith.mulf %381, %381 : vector<16x128xf32>
    %cst_125 = arith.constant dense<0.000000e+00> : vector<16xf32>
    %389 = vector.multi_reduction <add>, %388, %cst_125 [1] : vector<16x128xf32> to vector<16xf32>
    %390 = vector.shape_cast %389 : vector<16xf32> to vector<16x1xf32>
    %cst_126 = arith.constant 3.125000e-02 : f32
    %391 = vector.broadcast %cst_126 : f32 to vector<16x1xf32>
    %392 = arith.mulf %390, %391 : vector<16x1xf32>
    %393 = arith.mulf %387, %387 : vector<16x1xf32>
    %394 = arith.subf %392, %393 : vector<16x1xf32>
    %cst_127 = arith.constant 0.000000e+00 : f32
    %395 = vector.broadcast %cst_127 : f32 to vector<16x1xf32>
    %396 = arith.maximumf %394, %395 : vector<16x1xf32>
    %397 = vector.broadcast %387 : vector<16x1xf32> to vector<16x128xf32>
    %398 = arith.subf %381, %397 : vector<16x128xf32>
    %cst_128 = arith.constant 9.99999996E-13 : f32
    %399 = vector.broadcast %cst_128 : f32 to vector<16x1xf32>
    %400 = arith.addf %396, %399 : vector<16x1xf32>
    %401 = math.rsqrt %400 : vector<16x1xf32>
    %402 = vector.broadcast %401 : vector<16x1xf32> to vector<16x128xf32>
    %403 = arith.mulf %398, %402 : vector<16x128xf32>
    %404 = vector.broadcast %382 : vector<1x128xf32> to vector<16x128xf32>
    %405 = arith.mulf %403, %404 : vector<16x128xf32>
    %406 = vector.broadcast %383 : vector<1x128xf32> to vector<16x128xf32>
    %407 = arith.addf %405, %406 : vector<16x128xf32>
    %c0_129 = arith.constant 0 : index
    %c0_130 = arith.constant 0 : index
    %408 = vector.load %arg8[%c0_129, %c0_130] : memref<16x128xf32, #tpu.memory_space<vmem>>, vector<16x128xf32>
    tpu.vector_store %arg8[%c0_129, %c0_130], %407 {strides = array<i32>} : memref<16x128xf32, #tpu.memory_space<vmem>>, vector<16x128xf32>,
    return
  }
}

</mosaic_0001>

<bundles_post_ra>
// kernel: base_model_forward.1
= control target key start
LH: loop header
LB: loop body
LE: loop exit
PB: predicated region body
PF: predicated region fallthrough
CT: control target
= control target key end

     0   :  { %13 = vsyncpa [#allocation3], 0  ;;  %s5438_s0 = inlined_call_operand.vmem [shape: f32[16,128], index: 0, kind: input, shape index: {}]   ;;  %s5439_s1 = inlined_call_operand.vmem [shape: f32[16,16], index: 1, kind: input, shape index: {}]   ;;  %s5440_s2 = inlined_call_operand.vmem [shape: f32[2,128], index: 2, kind: input, shape index: {}]   ;;  %s5441_s3 = inlined_call_operand.hbm [shape: f32[2,128,384], index: 3, kind: input, shape index: {}]   ;;  %s5442_s4 = inlined_call_operand.vmem [shape: f32[2,128,128], index: 4, kind: input, shape index: {}]   ;;  %s5443_s5 = inlined_call_operand.hbm [shape: f32[2,128,128], index: 5, kind: input, shape index: {}]   ;;  %s5444_s6 = inlined_call_operand.hbm [shape: f32[2,128,128], index: 6, kind: input, shape index: {}]   ;;  %s5445_s7 = inlined_call_operand.vmem [shape: f32[2,10,128], index: 7, kind: input, shape index: {}]   ;;  %s5446_s8 = inlined_call_operand.vmem [shape: f32[16,128], index: 8, kind: output, shape index: {}]  }
   0x1   :  { %14 = vsyncpa [#allocation5], 0  ;;  %s4832_s27 = smov [#allocation4]   ;;  %s4762_s9 = scalar_lea.hbm %s5443_s5, 4096 }
   0x2   :  { %s40_s28 = sshll.u32 %s4832_s27, 4  ;;  %p4763_p0 = scmp.ne.s32.totalorder %s5443_s5, %s4762_s9  ;;  %s41_s28 = int_to_ptr.vmem [resolvable:$true] %s40_s28 }
   0x3   :  { %p4766_p1 = scmp.lt.u32.totalorder %s4762_s9, %s5443_s5 }
   0x5   :  { %p4768_p2 = pnand %p4766_p1, %p4763_p0 }
   0x7   :  { %4771 = shalt.err (!%p4768_p2)
}
   0x8   :  { %s4772_s14 = scalar_lea.vmem %s41_s28, 4096  ;;  %p4777_p4 = scmp.lt.s32.totalorder %s41_s28, %s41_s28 }
   0x9   :  { %p4773_p3 = scmp.ne.s32.totalorder %s41_s28, %s4772_s14  ;;  %p4778_p5 = scmp.lt.s32.totalorder %s4772_s14, %s4772_s14 }
   0xb   :  { %p4779_p6 = por %p4778_p5, %p4777_p4 }
   0xd   :  { %p4780_p7 = pnand %p4779_p6, %p4773_p3 }
   0xf   :  { %4783 = shalt.err (!%p4780_p7)
}
  0x10   :  { %s4833_s15 = smov 128   ;;  %s4834_s16 = smov 8  }
  0x11   :  { %46 = dma.hbm_to_vmem [thread:$0]  %s5443_s5, 4096, %s41_s28, [#allocation5], %s4833_s15, %s4833_s15, %s4834_s16  }
  0x12   :  { %s4835_s19 = smov [#allocation2]   ;;  %s4784_s23 = scalar_lea.hbm %s5441_s3, 12288 }
  0x13   :  { %s26_s20 = sshll.u32 %s4835_s19, 4  ;;  %p4785_p8 = scmp.ne.s32.totalorder %s5441_s3, %s4784_s23  ;;  %s27_s20 = int_to_ptr.vmem [resolvable:$true] %s26_s20 }
  0x14   :  { %p4788_p9 = scmp.lt.u32.totalorder %s4784_s23, %s5441_s3 }
  0x16   :  { %p4790_p10 = pnand %p4788_p9, %p4785_p8 }
  0x18   :  { %4793 = shalt.err (!%p4790_p10)
}
  0x19   :  { %s4794_s29 = scalar_lea.vmem %s27_s20, 12288  ;;  %p4799_p12 = scmp.lt.s32.totalorder %s27_s20, %s27_s20 }
  0x1a   :  { %p4795_p11 = scmp.ne.s32.totalorder %s27_s20, %s4794_s29  ;;  %p4800_p13 = scmp.lt.s32.totalorder %s4794_s29, %s4794_s29 }
  0x1c   :  { %p4801_p0 = por %p4800_p13, %p4799_p12 }
  0x1e   :  { %p4802_p1 = pnand %p4801_p0, %p4795_p11 }
  0x20   :  { %4805 = shalt.err (!%p4802_p1)
}
  0x21   :  { %s4836_s5 = smov 384   ;;  %s4837_s28 = smov 24  }
  0x22   :  { %32 = dma.hbm_to_vmem [thread:$0]  %s5441_s3, 12288, %s27_s20, [#allocation3], %s4836_s5, %s4836_s5, %s4837_s28  }
  0x23   :  { %s4838_s10 = smov [#allocation6]   ;;  %s4806_s14 = scalar_lea.hbm %s5444_s6, 4096 }
  0x24   :  { %s52_s11 = sshll.u32 %s4838_s10, 4  ;;  %p4807_p2 = scmp.ne.s32.totalorder %s5444_s6, %s4806_s14  ;;  %s53_s11 = int_to_ptr.vmem [resolvable:$true] %s52_s11 }
  0x25   :  { %p4810_p3 = scmp.lt.u32.totalorder %s4806_s14, %s5444_s6 }
  0x27   :  { %p4812_p4 = pnand %p4810_p3, %p4807_p2 }
  0x29   :  { %4815 = shalt.err (!%p4812_p4)
}
  0x2a   :  { %s4816_s22 = scalar_lea.vmem %s53_s11, 4096  ;;  %p4821_p6 = scmp.lt.s32.totalorder %s53_s11, %s53_s11 }
  0x2b   :  { %p4817_p5 = scmp.ne.s32.totalorder %s53_s11, %s4816_s22  ;;  %p4822_p7 = scmp.lt.s32.totalorder %s4816_s22, %s4816_s22 }
  0x2d   :  { %p4823_p8 = por %p4822_p7, %p4821_p6 }
  0x2f   :  { %p4824_p9 = pnand %p4823_p8, %p4817_p5 }
  0x31   :  { %4827 = shalt.err (!%p4824_p9)
}
  0x32   :  { %58 = dma.hbm_to_vmem [thread:$0]  %s5444_s6, 4096, %s53_s11, [#allocation5], %s4833_s15, %s4833_s15, %s4834_s16  }
  0x33   :  { %4828 = dma.done.wait [#allocation3], 12288  }
  0x34   :  { %4829 = vsyncadd [#allocation3], 4294955008 }
  0x35   :  { %4830 = dma.done.wait [#allocation5], 8192  }
  0x36   :  { %4831 = vsyncadd [#allocation5], 4294959104  ;;  %v4933_v0 = vld [vmem:[%s5438_s0 + $0x8] sm:$0xff]  ;;  %v4938_v1 = vld [vmem:[%s5438_s0] sm:$0xff]  ;;  %v4839_v55 = vmov 0.0   ;;  %vm384_vm0 = vcmask 261120  }
  0x37   :  { %v117_v2 = vld [vmem:[#allocation2 + $0x8] sm:$0xff]  ;;  %76 = vadd.xlane.f32.xlu1 %v4933_v0  ;;  %74 = vadd.xlane.f32.xlu0 %v4938_v1  ;;  %v81_v3 = vmul.f32 %v4933_v0, %v4933_v0  ;;  %v80_v4 = vmul.f32 %v4938_v1, %v4938_v1  ;;  %v120_v5 = vld [vmem:[#allocation2 + $0x20] sm:$0xff]  ;;  %v119_v7 = vld [vmem:[#allocation2 + $0x18] sm:$0xff]  ;;  %vm476_vm2 = vcmask 130048   ;;  %s4840_s9 = smov 96   ;;  %s4841_s10 = smov 64  }
  0x38   :  { %v116_v6 = vld [vmem:[#allocation2] sm:$0xff]  ;;  %v4185_v8 = vpack.c.bf16 %v120_v5, %v117_v2  ;;  %v118_v10 = vld [vmem:[#allocation2 + $0x10] sm:$0xff]  ;;  %v121_v11 = vld [vmem:[#allocation2 + $0x28] sm:$0xff]  ;;  %278 = vmatprep.mubr.f32.mxu0 %v4839_v55  ;;  %s4842_s6 = smov 32  }
  0x39   :  { %v4187_v9 = vpack.c.bf16 %v119_v7, %v116_v6  ;;  %v4217_v12 = vpack.c.bf16 %v121_v11, %v118_v10  ;;  %v123_v13 = vld [vmem:[#allocation2 + $0x38] sm:$0xff]  ;;  %v126_v14 = vld [vmem:[#allocation2 + $0x50] sm:$0xff]  ;;  %v125_v17 = vld [vmem:[#allocation2 + $0x48] sm:$0xff] }
  0x3a   :  { %4186 = vmatprep.subr.bf16.mxu0 %v4185_v8  ;;  %v4189_v15 = vpack.c.bf16 %v126_v14, %v123_v13  ;;  %v122_v16 = vld [vmem:[#allocation2 + $0x30] sm:$0xff]  ;;  %v124_v18 = vld [vmem:[#allocation2 + $0x40] sm:$0xff]  ;;  %v127_v20 = vld [vmem:[#allocation2 + $0x58] sm:$0xff] }
  0x3b   :  { %84 = vadd.xlane.f32.xlu1 %v81_v3  ;;  %82 = vadd.xlane.f32.xlu0 %v80_v4  ;;  %v4191_v19 = vpack.c.bf16 %v125_v17, %v122_v16  ;;  %v4221_v21 = vpack.c.bf16 %v127_v20, %v124_v18  ;;  %v129_v22 = vld [vmem:[#allocation2 + $0x68] sm:$0xff]  ;;  %v132_v23 = vld [vmem:[#allocation2 + $0x80] sm:$0xff]  ;;  %v131_v26 = vld [vmem:[#allocation2 + $0x78] sm:$0xff] }
  0x3c   :  { %4188 = vmatpush1.bf16.msra.mxu0 %v4187_v9  ;;  %4218 = vmatprep.subr.bf16.mxu1 %v4217_v12  ;;  %v4193_v24 = vpack.c.bf16 %v132_v23, %v129_v22  ;;  %v128_v25 = vld [vmem:[#allocation2 + $0x60] sm:$0xff]  ;;  %v130_v27 = vld [vmem:[#allocation2 + $0x70] sm:$0xff]  ;;  %v133_v29 = vld [vmem:[#allocation2 + $0x88] sm:$0xff] }
  0x3d   :  { %4220 = vmatpush3.bf16.msra.mxu1 %v4217_v12  ;;  %4190 = vmatprep.subr.bf16.mxu0 %v4189_v15  ;;  %v4195_v28 = vpack.c.bf16 %v131_v26, %v128_v25  ;;  %v4225_v30 = vpack.c.bf16 %v133_v29, %v130_v27  ;;  %v135_v31 = vld [vmem:[#allocation2 + $0x98] sm:$0xff]  ;;  %v138_v32 = vld [vmem:[#allocation2 + $0xb0] sm:$0xff]  ;;  %v137_v35 = vld [vmem:[#allocation2 + $0xa8] sm:$0xff] }
  0x3e   :  { %4222 = vmatprep.subr.bf16.mxu1 %v4221_v21  ;;  %v4197_v33 = vpack.c.bf16 %v138_v32, %v135_v31  ;;  %v134_v34 = vld [vmem:[#allocation2 + $0x90] sm:$0xff]  ;;  %v136_v36 = vld [vmem:[#allocation2 + $0xa0] sm:$0xff]  ;;  %v139_v38 = vld [vmem:[#allocation2 + $0xb8] sm:$0xff] }
  0x3f   :  { %v4199_v37 = vpack.c.bf16 %v137_v35, %v134_v34  ;;  %v4229_v39 = vpack.c.bf16 %v139_v38, %v136_v36  ;;  %v141_v40 = vld [vmem:[#allocation2 + $0xc8] sm:$0xff]  ;;  %v144_v41 = vld [vmem:[#allocation2 + $0xe0] sm:$0xff]  ;;  %v143_v44 = vld [vmem:[#allocation2 + $0xd8] sm:$0xff] }
  0x40   :  { %4192 = vmatpush1.bf16.msra.mxu0 %v4191_v19  ;;  %v4201_v42 = vpack.c.bf16 %v144_v41, %v141_v40  ;;  %v140_v43 = vld [vmem:[#allocation2 + $0xc0] sm:$0xff]  ;;  %v142_v45 = vld [vmem:[#allocation2 + $0xd0] sm:$0xff]  ;;  %v145_v47 = vld [vmem:[#allocation2 + $0xe8] sm:$0xff] }
  0x41   :  { %4224 = vmatpush3.bf16.msra.mxu1 %v4221_v21  ;;  %4194 = vmatprep.subr.bf16.mxu0 %v4193_v24  ;;  %v4203_v46 = vpack.c.bf16 %v143_v44, %v140_v43  ;;  %v147_v48 = vld [vmem:[#allocation2 + $0xf8] sm:$0xff]  ;;  %v150_v49 = vld [vmem:[#allocation2 + $0x110] sm:$0xff]  ;;  %v4233_v50 = vpack.c.bf16 %v145_v47, %v142_v45  ;;  %v149_v53 = vld [vmem:[#allocation2 + $0x108] sm:$0xff] }
  0x42   :  { %4226 = vmatprep.subr.bf16.mxu1 %v4225_v30  ;;  %v4205_v51 = vpack.c.bf16 %v150_v49, %v147_v48  ;;  %v146_v52 = vld [vmem:[#allocation2 + $0xf0] sm:$0xff]  ;;  %v148_v54 = vld [vmem:[#allocation2 + $0x100] sm:$0xff]  ;;  %v151_v57 = vld [vmem:[#allocation2 + $0x118] sm:$0xff] }
  0x43   :  { %v4207_v56 = vpack.c.bf16 %v149_v53, %v146_v52  ;;  %v153_v58 = vld [vmem:[#allocation2 + $0x128] sm:$0xff]  ;;  %v156_v59 = vld [vmem:[#allocation2 + $0x140] sm:$0xff]  ;;  %v4237_v60 = vpack.c.bf16 %v151_v57, %v148_v54  ;;  %v155_v63 = vld [vmem:[#allocation2 + $0x138] sm:$0xff] }
  0x44   :  { %4196 = vmatpush1.bf16.msra.mxu0 %v4195_v28  ;;  %v4209_v61 = vpack.c.bf16 %v156_v59, %v153_v58  ;;  %v152_v62 = vld [vmem:[#allocation2 + $0x120] sm:$0xff]  ;;  %v154_v2 = vld [vmem:[#allocation2 + $0x130] sm:$0xff]  ;;  %v157_v3 = vld [vmem:[#allocation2 + $0x148] sm:$0xff] }
  0x45   :  { %4228 = vmatpush3.bf16.msra.mxu1 %v4225_v30  ;;  %4198 = vmatprep.subr.bf16.mxu0 %v4197_v33  ;;  %v159_v4 = vld [vmem:[#allocation2 + $0x158] sm:$0xff]  ;;  %v162_v5 = vld [vmem:[#allocation2 + $0x170] sm:$0xff]  ;;  %v4241_v6 = vpack.c.bf16 %v157_v3, %v154_v2  ;;  %v4211_v7 = vpack.c.bf16 %v155_v63, %v152_v62  ;;  %v160_v8 = vld [vmem:[#allocation2 + $0x160] sm:$0xff] }
  0x46   :  { %4230 = vmatprep.subr.bf16.mxu1 %v4229_v39  ;;  %v163_v9 = vld [vmem:[#allocation2 + $0x178] sm:$0xff]  ;;  %v4213_v10 = vpack.c.bf16 %v162_v5, %v159_v4  ;;  %v158_v11 = vld [vmem:[#allocation2 + $0x150] sm:$0xff]  ;;  %v161_v12 = vld [vmem:[#allocation2 + $0x168] sm:$0xff] }
  0x47   :  { %v4245_v13 = vpack.c.bf16 %v163_v9, %v160_v8  ;;  %v4215_v14 = vpack.c.bf16 %v161_v12, %v158_v11  ;;  %v3471_v34 = vld [vmem:[%s5440_s2] ss:$0 sm:$0xff]  ;;  %vm4993_vm1 = vmpackc.low %vm384_vm0, %vm384_vm0 }
  0x48   :  { %4200 = vmatpush1.bf16.msra.mxu0 %v4199_v37  ;;  %v3472_v37 = vld [vmem:[%s5440_s2 + $0x1] ss:$0 sm:$0xff] }
  0x49   :  { %4232 = vmatpush3.bf16.msra.mxu1 %v4229_v39  ;;  %4202 = vmatprep.subr.bf16.mxu0 %v4201_v42  ;;  %v4972_v44 = vld [vmem:[%s5445_s7] sm:$0xff] }
  0x4a   :  { %4234 = vmatprep.subr.bf16.mxu1 %v4233_v50 }
  0x4c   :  { %4204 = vmatpush1.bf16.msra.mxu0 %v4203_v46 }
  0x4d   :  { %4206 = vmatprep.subr.bf16.mxu0 %v4205_v51  ;;  %4236 = vmatpush3.bf16.msra.mxu1 %v4233_v50 }
  0x4e   :  { %4238 = vmatprep.subr.bf16.mxu1 %v4237_v60 }
  0x50   :  { %4208 = vmatpush1.bf16.msra.mxu0 %v4207_v56 }
  0x51   :  { %4210 = vmatprep.subr.bf16.mxu0 %v4209_v61  ;;  %4240 = vmatpush3.bf16.msra.mxu1 %v4237_v60 }
  0x52   :  { %4242 = vmatprep.subr.bf16.mxu1 %v4241_v6 }
  0x54   :  { %4212 = vmatpush1.bf16.msra.mxu0 %v4211_v7  ;;  %v5010_v7 = vld [vmem:[%s5439_s1 + $0x8] sm:$0xff] }
  0x55   :  { %4214 = vmatprep.subr.bf16.mxu0 %v4213_v10  ;;  %4244 = vmatpush3.bf16.msra.mxu1 %v4241_v6  ;;  %v5015_v10 = vld [vmem:[%s5439_s1] sm:$0xff] }
  0x56   :  { %4246 = vmatprep.subr.bf16.mxu1 %v4245_v13 }
  0x58   :  { %4216 = vmatpush1.bf16.msra.mxu0 %v4215_v14 }
  0x59   :  { %4248 = vmatpush3.bf16.msra.mxu1 %v4245_v13 }
  0xc4   :  { %v77_v15 = vpop.xlane.xlu1 %76  ;;  %v75_v16 = vpop.xlane.xlu0 %74 }
  0xc5   :  { %v79_v17 = vmul.f32 0.03125, %v77_v15  ;;  %v78_v18 = vmul.f32 0.03125, %v75_v16 }
  0xc7   :  { %v89_v19 = vmul.f32 %v79_v17, %v79_v17  ;;  %v88_v22 = vmul.f32 %v78_v18, %v78_v18  ;;  %v95_v31 = vsub.f32 %v4933_v0, %v79_v17  ;;  %v94_v33 = vsub.f32 %v4938_v1, %v78_v18 }
  0xc8   :  { %v85_v20 = vpop.xlane.xlu1 %84  ;;  %v83_v21 = vpop.xlane.xlu0 %82  ;;  %v366_v0 = vlaneseq }
  0xc9   :  { %v87_v23 = vmul.f32 0.03125, %v85_v20  ;;  %v86_v24 = vmul.f32 0.03125, %v83_v21 }
  0xca   :  { %v4964_v1 = vshrl.u32 %v366_v0, 7 }
  0xcb   :  { %v91_v25 = vsub.f32 %v87_v23, %v89_v19  ;;  %v90_v26 = vsub.f32 %v86_v24, %v88_v22 }
  0xcc   :  { %v4967_v43 = vsub.s32 0, %v4964_v1  ;;  %v380_v45 = vsub.s32 2, %v4964_v1  ;;  %v4978_v47 = vsub.s32 1, %v4964_v1 }
  0xcd   :  { %v93_v27 = vmax.f32 %v91_v25, 0.0  ;;  %v92_v28 = vmax.f32 %v90_v26, 0.0 }
  0xce   :  { %v369_v46 = vrot.slane %v4972_v44, %v4967_v43  ;;  %v381_v48 = vrot.slane %v4972_v44, %v380_v45  ;;  %v375_v53 = vrot.slane %v4972_v44, %v4978_v47 }
  0xcf   :  { %v97_v29 = vadd.f32 1e-12, %v93_v27  ;;  %v96_v30 = vadd.f32 1e-12, %v92_v28 }
  0xd1   :  { %4668 = vrsqrt.f32 %v97_v29 }
  0xd2   :  { %4670 = vrsqrt.f32 %v96_v30 }
  0xdb   :  { %v4669_v32 = vpop.eup %4668 }
  0xdc   :  { %v4671_v35 = vpop.eup %4670  ;;  %v101_v36 = vmul.f32 %v4669_v32, %v95_v31 }
  0xdd   :  { %v100_v38 = vmul.f32 %v4671_v35, %v94_v33 }
  0xde   :  { %v107_v39 = vmul.f32 %v3471_v34, %v101_v36 }
  0xdf   :  { %v106_v40 = vmul.f32 %v3471_v34, %v100_v38 }
  0xe0   :  { %v4955_v41 = vadd.f32 %v3472_v37, %v107_v39 }
  0xe1   :  { %v4957_v42 = vadd.f32 %v3472_v37, %v106_v40 }
  0xe3   :  { %279 = vmatmul.mubr.f32.vlgmr.msra.gmra.mrb[0].mxu0 %v4957_v42  ;;  %3807 = vmatprep.mubr.f32.mxu1 %v4957_v42 }
  0xe4   :  { %3808 = vmatmul.mubr.f32.vlgmr.msra.gmra.mrb[0].mxu1 %v4955_v41  ;;  %284 = vmatprep.mubr.f32.mxu0 %v4839_v55 }
  0xe7   :  { %285 = vmatmul.mubr.f32.gmra.mrb[2].mxu0 %v4955_v41 }
 0x1b6   :  { %v280_v49 = vpop.f32.mrb[0].mxu0 }
 0x1b7   :  { %v4983_v50 = vadd.f32 %v369_v46, %v280_v49  ;;  %v282_v51 = vpop.f32.mrb[1].mxu0  ;;  %v3809_v52 = vpop.f32.mrb[0].mxu1 }
 0x1b8   :  { %v383_v54 = vadd.f32 %v3809_v52, %v381_v48  ;;  %v357_v56 = vpop.f32.mrb[1].mxu1  ;;  %v376_v62 = vadd.f32 %v375_v53, %v282_v51 }
 0x1b9   :  { %v382_v57 = vadd.f32 %v381_v48, %v357_v56  ;;  %3814 = vmatprep.mubr.msk.f32.mxu0 %vm384_vm0, %v4983_v50 }
 0x1ba   :  { %v286_v58 = vpop.f32.mrb[2].mxu0 }
 0x1bb   :  { %v288_v59 = vpop.f32.mrb[3].mxu0  ;;  %v4255_v60 = vpack.c.bf16 %v383_v54, %v382_v57  ;;  %v4989_v61 = vpack.i.bf16 %v383_v54, %v382_v57  ;;  %v5003_v5 = vadd.f32 %v369_v46, %v286_v58 }
 0x1bc   :  { %v377_v63 = vadd.f32 %v375_v53, %v288_v59 }
 0x1bd   :  { %4256 = vmatprep.subr.bf16.mxu1 %v4255_v60 }
 0x1be   :  { %4258 = vmatpush3.bf16.msra.mxu1 %v4255_v60  ;;  %v4249_v3 = vpack.c.bf16 %v377_v63, %v376_v62  ;;  %v4997_v4 = vpack.i.bf16 %v377_v63, %v376_v62 }
 0x1c0   :  { %4251 = vmatprep.subr.msk.bf16.mxu0 %vm4993_vm1, %v4249_v3 }
 0x1c1   :  { %4254 = vmatpush3.bf16.xpose.msk.msra.mxu0 %vm4993_vm1, %v4249_v3 }
 0x1c8   :  { %3815 = vmatmul.mubr.msk.f32.vlgmr.msra.gmra.mrb[4].mxu0 %vm384_vm0, %v5003_v5 }
 0x29b   :  { %v3816_v6 = vpop.f32.mrb[4].mxu0 }
 0x29c   :  { %v473_v8 = vmul.f32 0.35355338, %v3816_v6  ;;  %v463_v9 = vpop.f32.mrb[5].mxu0 }
 0x29d   :  { %v472_v11 = vmul.f32 0.35355338, %v463_v9 }
 0x29e   :  { %v475_v12 = vadd.f32 %v473_v8, %v5010_v7 }
 0x29f   :  { %v474_v13 = vadd.f32 %v472_v11, %v5015_v10 }
 0x2a0   :  { %v480_v14 = vsel %vm476_vm2, %v475_v12, -inf }
 0x2a1   :  { %481 = vmax.xlane.f32.xlu1 %v480_v14  ;;  %v477_v15 = vsel %vm476_vm2, %v474_v13, -inf  ;;  %v169_v14 = vld [vmem:[%s5442_s4 + $0x28] sm:$0xff] }
 0x2a2   :  { %478 = vmax.xlane.f32.xlu0 %v477_v15  ;;  %v170_v15 = vld [vmem:[%s5442_s4 + $0x30] sm:$0xff] }
 0x32e   :  { %v482_v16 = vpop.xlane.xlu1 %481 }
 0x32f   :  { %v484_v17 = vsub.f32 %v475_v12, %v482_v16  ;;  %v479_v18 = vpop.xlane.xlu0 %478 }
 0x330   :  { %v483_v19 = vsub.f32 %v474_v13, %v479_v18  ;;  %v168_v13 = vld [vmem:[%s5442_s4 + $0x20] sm:$0xff] }
 0x331   :  { %v487_v20 = vmul.f32 1.442695, %v484_v17  ;;  %v4269_v16 = vpack.c.bf16 %v169_v14, %v168_v13  ;;  %v171_v17 = vld [vmem:[%s5442_s4 + $0x38] sm:$0xff] }
 0x332   :  { %v485_v21 = vmul.f32 1.442695, %v483_v19  ;;  %v4273_v18 = vpack.c.bf16 %v171_v17, %v170_v15  ;;  %v175_v14 = vld [vmem:[%s5442_s4 + $0x58] sm:$0xff] }
 0x333   :  { %4672 = vpow2.f32 %v487_v20  ;;  %4270 = vmatprep.subr.bf16.mxu0 %v4269_v16 }
 0x334   :  { %4674 = vpow2.f32 %v485_v21  ;;  %4272 = vmatpush3.bf16.msra.mxu0 %v4269_v16 }
 0x335   :  { %4274 = vmatprep.subr.bf16.mxu0 %v4273_v18 }
 0x338   :  { %4276 = vmatpush3.bf16.msra.mxu0 %v4273_v18 }
 0x33d   :  { %v4673_v22 = vpop.eup %4672 }
 0x33e   :  { %v4675_v23 = vpop.eup %4674  ;;  %v492_v24 = vsel %vm476_vm2, %v4673_v22, 0.0 }
 0x33f   :  { %493 = vadd.xlane.f32.xlu1 %v492_v24  ;;  %v489_v25 = vsel %vm476_vm2, %v4675_v23, 0.0 }
 0x340   :  { %490 = vadd.xlane.f32.xlu0 %v489_v25 }
 0x350   :  { %580 = vrot.lane.b32.xlu1 %v4983_v50, %s4840_s9 }
 0x354   :  { %582 = vrot.lane.b32.xlu1 %v5003_v5, %s4840_s9 }
 0x356   :  { %4609 = vrot.lane.b32.xlu0 %v4997_v4, %s4840_s9 }
 0x3cc   :  { %v494_v26 = vpop.xlane.xlu1 %493 }
 0x3cd   :  { %4676 = vrcp.f32 %v494_v26  ;;  %v491_v27 = vpop.xlane.xlu0 %490 }
 0x3ce   :  { %4678 = vrcp.f32 %v491_v27 }
 0x3d0   :  { %v581_v36 = vpop.permute.xlu1 %580 }
 0x3d1   :  { %v4610_v28 = vpop.permute.xlu0 %4609 }
 0x3d2   :  { %v4612_v29 = vunpack.i.h.bf16 %v4610_v28  ;;  %v4611_v30 = vunpack.i.l.bf16 %v4610_v28 }
 0x3d4   :  { %v4259_v31 = vpack.c.bf16 %v4612_v29, %v4611_v30  ;;  %v583_v37 = vpop.permute.xlu1 %582 }
 0x3d6   :  { %4261 = vmatprep.subr.msk.bf16.mxu1 %vm4993_vm1, %v4259_v31 }
 0x3d7   :  { %v4677_v32 = vpop.eup %4676 }
 0x3d8   :  { %v4679_v33 = vpop.eup %4678  ;;  %v498_v35 = vmul.f32 %v4677_v32, %v4673_v22  ;;  %v165_v32 = vld [vmem:[%s5442_s4 + $0x8] sm:$0xff] }
 0x3d9   :  { %v497_v34 = vmul.f32 %v4679_v33, %v4675_v23 }
 0x3db   :  { %3821 = vmatprep.mubr.msk.f32.mxu1 %vm476_vm2, %v497_v34  ;;  %v166_v34 = vld [vmem:[%s5442_s4 + $0x10] sm:$0xff] }
 0x3dc   :  { %3822 = vmatmul.mubr.msk.f32.vlgmr.msra.gmra.mrb[2].mxu1 %vm476_vm2, %v498_v35  ;;  %v167_v35 = vld [vmem:[%s5442_s4 + $0x18] sm:$0xff] }
 0x3dd   :  { %4264 = vmatpush3.bf16.xpose.msk.msra.mxu1 %vm4993_vm1, %v4259_v31  ;;  %3828 = vmatprep.mubr.msk.f32.mxu1 %vm384_vm0, %v581_v36  ;;  %v164_v31 = vld [vmem:[%s5442_s4] sm:$0xff] }
 0x3de   :  { %v4277_v33 = vpack.c.bf16 %v165_v32, %v164_v31 }
 0x3e0   :  { %4278 = vmatprep.subr.bf16.mxu0 %v4277_v33 }
 0x3e4   :  { %3829 = vmatmul.mubr.msk.f32.vlgmr.msra.gmra.mrb[4].mxu1 %vm384_vm0, %v583_v37 }
 0x4af   :  { %v5037_v38 = vpop.f32.mrb[2].mxu1 }
 0x4b0   :  { %v5039_v39 = vpop.f32.mrb[3].mxu1 }
 0x4b7   :  { %v3830_v40 = vpop.f32.mrb[4].mxu1 }
 0x4b8   :  { %v672_v0 = vmul.f32 0.35355338, %v3830_v40  ;;  %v662_v46 = vpop.f32.mrb[5].mxu1  ;;  %v4281_v40 = vpack.c.bf16 %v167_v35, %v166_v34 }
 0x4b9   :  { %v671_v48 = vmul.f32 0.35355338, %v662_v46 }
 0x4ba   :  { %v674_v49 = vadd.f32 %v672_v0, %v5010_v7 }
 0x4bb   :  { %v673_v51 = vadd.f32 %v671_v48, %v5015_v10 }
 0x4bc   :  { %v678_v52 = vsel %vm476_vm2, %v674_v49, -inf }
 0x4bd   :  { %679 = vmax.xlane.f32.xlu0 %v678_v52  ;;  %v675_v53 = vsel %vm476_vm2, %v673_v51, -inf }
 0x4be   :  { %676 = vmax.xlane.f32.xlu1 %v675_v53 }
 0x4cf   :  { %4614 = vrot.lane.b32.xlu1 %v4989_v61, %s4840_s9 }
 0x4d3   :  { %948 = vrot.lane.b32.xlu1 %v4983_v50, %s4841_s10 }
 0x4d7   :  { %950 = vrot.lane.b32.xlu1 %v5003_v5, %s4841_s10 }
 0x54a   :  { %v680_v54 = vpop.xlane.xlu0 %679 }
 0x54b   :  { %v682_v56 = vsub.f32 %v674_v49, %v680_v54  ;;  %v677_v57 = vpop.xlane.xlu1 %676 }
 0x54c   :  { %v681_v58 = vsub.f32 %v673_v51, %v677_v57 }
 0x54d   :  { %v685_v59 = vmul.f32 1.442695, %v682_v56 }
 0x54e   :  { %v683_v60 = vmul.f32 1.442695, %v681_v58 }
 0x54f   :  { %4680 = vpow2.f32 %v685_v59  ;;  %v4615_v62 = vpop.permute.xlu1 %4614 }
 0x550   :  { %v4617_v63 = vunpack.i.h.bf16 %v4615_v62  ;;  %v4616_v3 = vunpack.i.l.bf16 %v4615_v62  ;;  %4682 = vpow2.f32 %v683_v60 }
 0x552   :  { %v4265_v6 = vpack.c.bf16 %v4617_v63, %v4616_v3 }
 0x553   :  { %v949_v29 = vpop.permute.xlu1 %948 }
 0x554   :  { %4266 = vmatprep.subr.bf16.mxu1 %v4265_v6 }
 0x555   :  { %4268 = vmatpush3.bf16.msra.mxu1 %v4265_v6 }
 0x557   :  { %v951_v30 = vpop.permute.xlu1 %950 }
 0x559   :  { %v4681_v8 = vpop.eup %4680 }
 0x55a   :  { %v690_v9 = vsel %vm476_vm2, %v4681_v8, 0.0  ;;  %v4683_v11 = vpop.eup %4682 }
 0x55b   :  { %691 = vadd.xlane.f32.xlu0 %v690_v9  ;;  %v687_v12 = vsel %vm476_vm2, %v4683_v11, 0.0  ;;  %v172_v9 = vld [vmem:[%s5442_s4 + $0x40] sm:$0xff] }
 0x55f   :  { %688 = vadd.xlane.f32.xlu0 %v687_v12  ;;  %v174_v12 = vld [vmem:[%s5442_s4 + $0x50] sm:$0xff] }
 0x560   :  { %v4299_v15 = vpack.c.bf16 %v175_v14, %v174_v12 }
 0x575   :  { %4619 = vrot.lane.b32.xlu0 %v4997_v4, %s4841_s10 }
 0x5e8   :  { %v692_v19 = vpop.xlane.xlu0 %691 }
 0x5e9   :  { %4684 = vrcp.f32 %v692_v19 }
 0x5ec   :  { %v689_v20 = vpop.xlane.xlu0 %688 }
 0x5ed   :  { %4686 = vrcp.f32 %v689_v20 }
 0x5f0   :  { %v4620_v21 = vpop.permute.xlu0 %4619 }
 0x5f1   :  { %v4622_v22 = vunpack.i.h.bf16 %v4620_v21  ;;  %v4621_v23 = vunpack.i.l.bf16 %v4620_v21 }
 0x5f3   :  { %v4285_v24 = vpack.c.bf16 %v4622_v22, %v4621_v23  ;;  %v4685_v25 = vpop.eup %4684 }
 0x5f4   :  { %v696_v28 = vmul.f32 %v4685_v25, %v4681_v8 }
 0x5f5   :  { %4287 = vmatprep.subr.msk.bf16.mxu1 %vm4993_vm1, %v4285_v24 }
 0x5f7   :  { %v4687_v26 = vpop.eup %4686 }
 0x5f8   :  { %v695_v27 = vmul.f32 %v4687_v26, %v4683_v11  ;;  %v173_v11 = vld [vmem:[%s5442_s4 + $0x48] sm:$0xff] }
 0x5f9   :  { %v4295_v13 = vpack.c.bf16 %v173_v11, %v172_v9  ;;  %v1524_v11 = vsub.s32 3, %v4964_v1 }
 0x5fa   :  { %3835 = vmatprep.mubr.msk.f32.mxu1 %vm476_vm2, %v695_v27 }
 0x5fb   :  { %3836 = vmatmul.mubr.msk.f32.vlgmr.msra.gmra.mrb[6].mxu1 %vm476_vm2, %v696_v28  ;;  %v1525_v12 = vrot.slane %v4972_v44, %v1524_v11 }
 0x5fc   :  { %4290 = vmatpush3.bf16.xpose.msk.msra.mxu1 %vm4993_vm1, %v4285_v24  ;;  %3864 = vmatprep.mubr.msk.f32.mxu1 %vm384_vm0, %v949_v29 }
 0x603   :  { %3865 = vmatmul.mubr.msk.f32.vlgmr.msra.gmra.mrb[8].mxu1 %vm384_vm0, %v951_v30 }
 0x6ce   :  { %v3837_v36 = vpop.f32.mrb[6].mxu1 }
 0x6cf   :  { %v777_v37 = vpop.f32.mrb[7].mxu1 }
 0x6d0   :  { %3846 = vmatprep.mubr.msk.f32.mxu0 %vm384_vm0, %v777_v37 }
 0x6d1   :  { %3847 = vmatmul.mubr.msk.f32.vlgmr.msra.gmra.mrb[6].mxu0 %vm384_vm0, %v3837_v36 }
 0x6d2   :  { %4280 = vmatpush3.bf16.msra.mxu0 %v4277_v33  ;;  %3857 = vmatprep.mubr.msk.f32.mxu0 %vm384_vm0, %v5039_v39 }
 0x6d3   :  { %4282 = vmatprep.subr.bf16.mxu0 %v4281_v40 }
 0x6d6   :  { %v3866_v0 = vpop.f32.mrb[8].mxu1  ;;  %4284 = vmatpush3.bf16.msra.mxu0 %v4281_v40 }
 0x6d7   :  { %v1040_v46 = vmul.f32 0.35355338, %v3866_v0  ;;  %v1030_v48 = vpop.f32.mrb[9].mxu1  ;;  %4296 = vmatprep.subr.bf16.mxu0 %v4295_v13 }
 0x6d8   :  { %v1039_v49 = vmul.f32 0.35355338, %v1030_v48 }
 0x6d9   :  { %3858 = vmatmul.mubr.msk.f32.vlgmr.msra.gmra.mrb[6].mxu0 %vm384_vm0, %v5037_v38  ;;  %v1042_v51 = vadd.f32 %v1040_v46, %v5010_v7 }
 0x6da   :  { %v1041_v52 = vadd.f32 %v1039_v49, %v5015_v10  ;;  %4298 = vmatpush3.bf16.msra.mxu0 %v4295_v13 }
 0x6db   :  { %v1046_v53 = vsel %vm476_vm2, %v1042_v51, -inf  ;;  %4300 = vmatprep.subr.bf16.mxu0 %v4299_v15 }
 0x6dc   :  { %1047 = vmax.xlane.f32.xlu0 %v1046_v53  ;;  %v1043_v54 = vsel %vm476_vm2, %v1041_v52, -inf }
 0x6dd   :  { %1044 = vmax.xlane.f32.xlu1 %v1043_v54 }
 0x6de   :  { %4302 = vmatpush3.bf16.msra.mxu0 %v4299_v15 }
 0x6ee   :  { %4624 = vrot.lane.b32.xlu1 %v4989_v61, %s4841_s10 }
 0x6f2   :  { %1235 = vrot.lane.b32.xlu1 %v4983_v50, %s4842_s6 }
 0x6f6   :  { %1237 = vrot.lane.b32.xlu1 %v5003_v5, %s4842_s6 }
 0x769   :  { %v1048_v38 = vpop.xlane.xlu0 %1047 }
 0x76a   :  { %v1050_v39 = vsub.f32 %v1042_v51, %v1048_v38  ;;  %v1045_v56 = vpop.xlane.xlu1 %1044 }
 0x76b   :  { %v1049_v57 = vsub.f32 %v1041_v52, %v1045_v56  ;;  %v177_v56 = vld [vmem:[%s5442_s4 + $0x68] sm:$0xff] }
 0x76c   :  { %v1053_v58 = vmul.f32 1.442695, %v1050_v39  ;;  %v176_v39 = vld [vmem:[%s5442_s4 + $0x60] sm:$0xff] }
 0x76d   :  { %v1051_v59 = vmul.f32 1.442695, %v1049_v57  ;;  %v178_v57 = vld [vmem:[%s5442_s4 + $0x70] sm:$0xff] }
 0x76e   :  { %4688 = vpow2.f32 %v1053_v58  ;;  %v4625_v60 = vpop.permute.xlu1 %4624  ;;  %v4313_v58 = vpack.c.bf16 %v177_v56, %v176_v39 }
 0x76f   :  { %v4627_v62 = vunpack.i.h.bf16 %v4625_v60  ;;  %v4626_v63 = vunpack.i.l.bf16 %v4625_v60  ;;  %4690 = vpow2.f32 %v1051_v59  ;;  %v179_v59 = vld [vmem:[%s5442_s4 + $0x78] sm:$0xff] }
 0x770   :  { %v4317_v60 = vpack.c.bf16 %v179_v59, %v178_v57  ;;  %4314 = vmatprep.subr.bf16.mxu0 %v4313_v58 }
 0x771   :  { %v4291_v3 = vpack.c.bf16 %v4627_v62, %v4626_v63 }
 0x772   :  { %v1236_v25 = vpop.permute.xlu1 %1235 }
 0x773   :  { %4292 = vmatprep.subr.bf16.mxu1 %v4291_v3 }
 0x774   :  { %4294 = vmatpush3.bf16.msra.mxu1 %v4291_v3 }
 0x776   :  { %v1238_v26 = vpop.permute.xlu1 %1237 }
 0x778   :  { %v4689_v6 = vpop.eup %4688 }
 0x779   :  { %v1058_v50 = vsel %vm476_vm2, %v4689_v6, 0.0  ;;  %v4691_v8 = vpop.eup %4690 }
 0x77a   :  { %1059 = vadd.xlane.f32.xlu0 %v1058_v50  ;;  %v1055_v5 = vsel %vm476_vm2, %v4691_v8, 0.0 }
 0x77e   :  { %1056 = vadd.xlane.f32.xlu0 %v1055_v5 }
 0x794   :  { %4629 = vrot.lane.b32.xlu0 %v4997_v4, %s4842_s6 }
 0x807   :  { %v1060_v4 = vpop.xlane.xlu0 %1059 }
 0x808   :  { %4692 = vrcp.f32 %v1060_v4 }
 0x80b   :  { %v1057_v16 = vpop.xlane.xlu0 %1056 }
 0x80c   :  { %4694 = vrcp.f32 %v1057_v16 }
 0x80f   :  { %v4630_v17 = vpop.permute.xlu0 %4629 }
 0x810   :  { %v4632_v18 = vunpack.i.h.bf16 %v4630_v17  ;;  %v4631_v19 = vunpack.i.l.bf16 %v4630_v17 }
 0x812   :  { %v4303_v20 = vpack.c.bf16 %v4632_v18, %v4631_v19  ;;  %v4693_v21 = vpop.eup %4692 }
 0x813   :  { %v1064_v24 = vmul.f32 %v4693_v21, %v4689_v6  ;;  %v181_v21 = vld [vmem:[#allocation4 + $0x8] sm:$0xff] }
 0x814   :  { %4305 = vmatprep.subr.msk.bf16.mxu1 %vm4993_vm1, %v4303_v20 }
 0x816   :  { %v4695_v22 = vpop.eup %4694 }
 0x817   :  { %v1063_v23 = vmul.f32 %v4695_v22, %v4691_v8  ;;  %v182_v22 = vld [vmem:[#allocation4 + $0x10] sm:$0xff] }
 0x819   :  { %3871 = vmatprep.mubr.msk.f32.mxu1 %vm476_vm2, %v1063_v23  ;;  %v183_v23 = vld [vmem:[#allocation4 + $0x18] sm:$0xff] }
 0x81a   :  { %3872 = vmatmul.mubr.msk.f32.vlgmr.msra.gmra.mrb[10].mxu1 %vm476_vm2, %v1064_v24  ;;  %v4325_v24 = vpack.c.bf16 %v183_v23, %v182_v22  ;;  %v200_v23 = vld [vmem:[#allocation6 + $0x20] sm:$0xff] }
 0x81b   :  { %4308 = vmatpush3.bf16.xpose.msk.msra.mxu1 %vm4993_vm1, %v4303_v20  ;;  %3889 = vmatprep.mubr.msk.f32.mxu1 %vm384_vm0, %v1236_v25  ;;  %v180_v20 = vld [vmem:[#allocation4] sm:$0xff]  ;;  %v185_v25 = vld [vmem:[#allocation4 + $0x28] sm:$0xff] }
 0x822   :  { %3890 = vmatmul.mubr.msk.f32.vlgmr.msra.gmra.mrb[12].mxu1 %vm384_vm0, %v1238_v26 }
 0x8ed   :  { %v3873_v27 = vpop.f32.mrb[10].mxu1 }
 0x8ee   :  { %v1143_v28 = vpop.f32.mrb[11].mxu1 }
 0x8ef   :  { %3882 = vmatprep.mubr.msk.f32.mxu0 %vm384_vm0, %v1143_v28  ;;  %v187_v28 = vld [vmem:[#allocation4 + $0x38] sm:$0xff] }
 0x8f0   :  { %3883 = vmatmul.mubr.msk.f32.vlgmr.msra.gmra.mrb[6].mxu0 %vm384_vm0, %v3873_v27  ;;  %v186_v27 = vld [vmem:[#allocation4 + $0x30] sm:$0xff] }
 0x8f1   :  { %4316 = vmatpush3.bf16.msra.mxu0 %v4313_v58 }
 0x8f2   :  { %4318 = vmatprep.subr.bf16.mxu0 %v4317_v60 }
 0x8f5   :  { %v3891_v29 = vpop.f32.mrb[12].mxu1  ;;  %4320 = vmatpush3.bf16.msra.mxu0 %v4317_v60 }
 0x8f6   :  { %v1327_v30 = vmul.f32 0.35355338, %v3891_v29  ;;  %v1317_v31 = vpop.f32.mrb[13].mxu1  ;;  %v4333_v29 = vpack.c.bf16 %v187_v28, %v186_v27  ;;  %v204_v28 = vld [vmem:[#allocation6 + $0x40] sm:$0xff] }
 0x8f7   :  { %v1326_v32 = vmul.f32 0.35355338, %v1317_v31  ;;  %v189_v31 = vld [vmem:[#allocation4 + $0x48] sm:$0xff] }
 0x8f8   :  { %v1329_v33 = vadd.f32 %v1327_v30, %v5010_v7  ;;  %v188_v30 = vld [vmem:[#allocation4 + $0x40] sm:$0xff] }
 0x8f9   :  { %v1328_v34 = vadd.f32 %v1326_v32, %v5015_v10  ;;  %v4337_v32 = vpack.c.bf16 %v189_v31, %v188_v30  ;;  %v206_v30 = vld [vmem:[#allocation6 + $0x50] sm:$0xff] }
 0x8fa   :  { %v1333_v35 = vsel %vm476_vm2, %v1329_v33, -inf }
 0x8fb   :  { %1334 = vmax.xlane.f32.xlu0 %v1333_v35  ;;  %v1330_v36 = vsel %vm476_vm2, %v1328_v34, -inf  ;;  %v192_v35 = vld [vmem:[#allocation4 + $0x60] sm:$0xff] }
 0x8fc   :  { %1331 = vmax.xlane.f32.xlu1 %v1330_v36 }
 0x90d   :  { %4634 = vrot.lane.b32.xlu1 %v4989_v61, %s4842_s6 }
 0x988   :  { %v1335_v37 = vpop.xlane.xlu0 %1334 }
 0x989   :  { %v1337_v40 = vsub.f32 %v1329_v33, %v1335_v37  ;;  %v1332_v0 = vpop.xlane.xlu1 %1331  ;;  %v190_v33 = vld [vmem:[#allocation4 + $0x50] sm:$0xff]  ;;  %v193_v37 = vld [vmem:[#allocation4 + $0x68] sm:$0xff] }
 0x98a   :  { %v1336_v46 = vsub.f32 %v1328_v34, %v1332_v0  ;;  %v191_v34 = vld [vmem:[#allocation4 + $0x58] sm:$0xff]  ;;  %v194_v0 = vld [vmem:[#allocation4 + $0x70] sm:$0xff] }
 0x98b   :  { %v1340_v48 = vmul.f32 1.442695, %v1337_v40  ;;  %v4341_v36 = vpack.c.bf16 %v191_v34, %v190_v33  ;;  %v4345_v40 = vpack.c.bf16 %v193_v37, %v192_v35  ;;  %v208_v34 = vld [vmem:[#allocation6 + $0x60] sm:$0xff]  ;;  %v209_v35 = vld [vmem:[#allocation6 + $0x68] sm:$0xff]  ;;  %v210_v37 = vld [vmem:[#allocation6 + $0x70] sm:$0xff] }
 0x98c   :  { %v1338_v49 = vmul.f32 1.442695, %v1336_v46  ;;  %v195_v46 = vld [vmem:[#allocation4 + $0x78] sm:$0xff] }
 0x98d   :  { %v4635_v51 = vpop.permute.xlu1 %4634 }
 0x98e   :  { %4696 = vpow2.f32 %v1338_v49  ;;  %v4637_v7 = vunpack.i.h.bf16 %v4635_v51  ;;  %v4636_v52 = vunpack.i.l.bf16 %v4635_v51 }
 0x98f   :  { %4698 = vpow2.f32 %v1340_v48  ;;  %v4349_v48 = vpack.c.bf16 %v195_v46, %v194_v0  ;;  %v1572_v46 = vsub.s32 4, %v4964_v1 }
 0x990   :  { %v4309_v10 = vpack.c.bf16 %v4637_v7, %v4636_v52 }
 0x992   :  { %4310 = vmatprep.subr.bf16.mxu1 %v4309_v10 }
 0x993   :  { %4312 = vmatpush3.bf16.msra.mxu1 %v4309_v10 }
 0x998   :  { %v4697_v53 = vpop.eup %4696 }
 0x999   :  { %v1342_v54 = vsel %vm476_vm2, %v4697_v53, 0.0  ;;  %v4699_v38 = vpop.eup %4698 }
 0x99a   :  { %1343 = vadd.xlane.f32.xlu0 %v1342_v54  ;;  %v1345_v61 = vsel %vm476_vm2, %v4699_v38, 0.0 }
 0x99e   :  { %1346 = vadd.xlane.f32.xlu0 %v1345_v61 }
 0xa27   :  { %v1344_v62 = vpop.xlane.xlu0 %1343 }
 0xa28   :  { %4700 = vrcp.f32 %v1344_v62 }
 0xa2b   :  { %v1347_v63 = vpop.xlane.xlu0 %1346 }
 0xa2c   :  { %4702 = vrcp.f32 %v1347_v63  ;;  %v1560_v63 = vsub.s32 6, %v4964_v1 }
 0xa32   :  { %v4701_v3 = vpop.eup %4700 }
 0xa33   :  { %v1350_v6 = vmul.f32 %v4701_v3, %v4697_v53  ;;  %v1566_v3 = vsub.s32 7, %v4964_v1 }
 0xa35   :  { %3896 = vmatprep.mubr.msk.f32.mxu1 %vm476_vm2, %v1350_v6 }
 0xa36   :  { %v4703_v50 = vpop.eup %4702 }
 0xa37   :  { %v1351_v8 = vmul.f32 %v4703_v50, %v4699_v38  ;;  %v1561_v50 = vrot.slane %v4972_v44, %v1560_v63 }
 0xa39   :  { %3897 = vmatmul.mubr.msk.f32.vlgmr.msra.gmra.mrb[14].mxu1 %vm476_vm2, %v1351_v8 }
 0xb0c   :  { %v3898_v5 = vpop.f32.mrb[14].mxu1 }
 0xb0d   :  { %v1430_v9 = vpop.f32.mrb[15].mxu1 }
 0xb0e   :  { %3907 = vmatprep.mubr.msk.f32.mxu0 %vm384_vm0, %v1430_v9  ;;  %v1567_v9 = vrot.slane %v4972_v44, %v1566_v3 }
 0xb0f   :  { %3908 = vmatmul.mubr.msk.f32.vlgmr.msra.gmra.mrb[6].mxu0 %vm384_vm0, %v3898_v5 }
 0xbe2   :  { %v3909_v13 = vpop.f32.mrb[6].mxu0 }
 0xbe3   :  { %v1527_v14 = vadd.f32 %v3909_v13, %v1525_v12  ;;  %v1511_v15 = vpop.f32.mrb[7].mxu0 }
 0xbe4   :  { %v1526_v16 = vadd.f32 %v1525_v12, %v1511_v15 }
 0xbe5   :  { %v5158_v4 = vadd.f32 %v1527_v14, %v4955_v41  ;;  %v4321_v41 = vpack.c.bf16 %v181_v21, %v180_v20  ;;  %v197_v20 = vld [vmem:[#allocation6 + $0x8] sm:$0xff] }
 0xbe6   :  { %v5162_v17 = vadd.f32 %v1526_v16, %v4957_v42  ;;  %v184_v42 = vld [vmem:[#allocation4 + $0x20] sm:$0xff] }
 0xbe7   :  { %1532 = vadd.xlane.f32.xlu0 %v5158_v4  ;;  %v1537_v19 = vmul.f32 %v5158_v4, %v5158_v4  ;;  %4322 = vmatprep.subr.bf16.mxu1 %v4321_v41  ;;  %v4329_v26 = vpack.c.bf16 %v185_v25, %v184_v42  ;;  %v202_v25 = vld [vmem:[#allocation6 + $0x30] sm:$0xff] }
 0xbe8   :  { %v1536_v18 = vmul.f32 %v5162_v17, %v5162_v17  ;;  %4324 = vmatpush3.bf16.msra.mxu1 %v4321_v41  ;;  %v199_v41 = vld [vmem:[#allocation6 + $0x18] sm:$0xff] }
 0xbe9   :  { %4326 = vmatprep.subr.bf16.mxu1 %v4325_v24 }
 0xbeb   :  { %1530 = vadd.xlane.f32.xlu0 %v5162_v17 }
 0xbec   :  { %4328 = vmatpush3.bf16.msra.mxu1 %v4325_v24  ;;  %v201_v24 = vld [vmem:[#allocation6 + $0x28] sm:$0xff] }
 0xbed   :  { %4330 = vmatprep.subr.bf16.mxu1 %v4329_v26  ;;  %v4361_v42 = vpack.c.bf16 %v201_v24, %v200_v23 }
 0xbef   :  { %1538 = vadd.xlane.f32.xlu0 %v1536_v18 }
 0xbf0   :  { %4332 = vmatpush3.bf16.msra.mxu1 %v4329_v26  ;;  %v203_v26 = vld [vmem:[#allocation6 + $0x38] sm:$0xff] }
 0xbf1   :  { %4334 = vmatprep.subr.bf16.mxu1 %v4333_v29  ;;  %v4365_v27 = vpack.c.bf16 %v203_v26, %v202_v25 }
 0xbf3   :  { %1540 = vadd.xlane.f32.xlu0 %v1537_v19  ;;  %v196_v19 = vld [vmem:[#allocation6] sm:$0xff] }
 0xbf4   :  { %4336 = vmatpush3.bf16.msra.mxu1 %v4333_v29  ;;  %v4353_v21 = vpack.c.bf16 %v197_v20, %v196_v19  ;;  %v205_v29 = vld [vmem:[#allocation6 + $0x48] sm:$0xff]  ;;  %v1792_v19 = vld [vmem:[#allocation2 + $0x198] sm:$0xff] }
 0xbf5   :  { %4338 = vmatprep.subr.bf16.mxu1 %v4337_v32  ;;  %v4369_v31 = vpack.c.bf16 %v205_v29, %v204_v28  ;;  %v1799_v28 = vld [vmem:[#allocation2 + $0x1d0] sm:$0xff] }
 0xbf6   :  { %4354 = vmatprep.subr.bf16.mxu0 %v4353_v21  ;;  %v1791_v29 = vld [vmem:[#allocation2 + $0x190] sm:$0xff] }
 0xbf7   :  { %4356 = vmatpush3.bf16.msra.mxu0 %v4353_v21  ;;  %v1669_v21 = vsub.s32 5, %v4964_v1 }
 0xbf8   :  { %4340 = vmatpush3.bf16.msra.mxu1 %v4337_v32  ;;  %v207_v32 = vld [vmem:[#allocation6 + $0x58] sm:$0xff] }
 0xbf9   :  { %4342 = vmatprep.subr.bf16.mxu1 %v4341_v36  ;;  %v4373_v33 = vpack.c.bf16 %v207_v32, %v206_v30  ;;  %v1794_v30 = vld [vmem:[#allocation2 + $0x1a8] sm:$0xff] }
 0xbfa   :  { %v4417_v32 = vpack.c.bf16 %v1794_v30, %v1791_v29  ;;  %v1835_v30 = vld [vmem:[#allocation2 + $0x2f0] sm:$0xff] }
 0xbfc   :  { %4344 = vmatpush3.bf16.msra.mxu1 %v4341_v36  ;;  %v4377_v36 = vpack.c.bf16 %v209_v35, %v208_v34  ;;  %v1802_v34 = vld [vmem:[#allocation2 + $0x1e8] sm:$0xff]  ;;  %v1805_v35 = vld [vmem:[#allocation2 + $0x200] sm:$0xff] }
 0xbfd   :  { %4346 = vmatprep.subr.bf16.mxu1 %v4345_v40 }
 0xc00   :  { %4348 = vmatpush3.bf16.msra.mxu1 %v4345_v40  ;;  %v211_v40 = vld [vmem:[#allocation6 + $0x78] sm:$0xff] }
 0xc01   :  { %4350 = vmatprep.subr.bf16.mxu1 %v4349_v48  ;;  %v4381_v0 = vpack.c.bf16 %v211_v40, %v210_v37  ;;  %v4393_v37 = vpack.c.bf16 %v1805_v35, %v1802_v34  ;;  %v1800_v40 = vld [vmem:[#allocation2 + $0x1d8] sm:$0xff]  ;;  %v1834_v34 = vld [vmem:[#allocation2 + $0x2e8] sm:$0xff] }
 0xc04   :  { %4352 = vmatpush3.bf16.msra.mxu1 %v4349_v48  ;;  %v1573_v48 = vrot.slane %v4972_v44, %v1572_v46 }
 0xc74   :  { %v1533_v49 = vpop.xlane.xlu0 %1532 }
 0xc75   :  { %v1535_v10 = vmul.f32 0.03125, %v1533_v49 }
 0xc77   :  { %v1545_v39 = vmul.f32 %v1535_v10, %v1535_v10  ;;  %v1551_v12 = vsub.f32 %v5158_v4, %v1535_v10  ;;  %v198_v4 = vld [vmem:[#allocation6 + $0x10] sm:$0xff] }
 0xc78   :  { %v1531_v51 = vpop.xlane.xlu0 %1530  ;;  %v4357_v22 = vpack.c.bf16 %v199_v41, %v198_v4  ;;  %v1670_v4 = vrot.slane %v4972_v44, %v1669_v21 }
 0xc79   :  { %v1534_v7 = vmul.f32 0.03125, %v1531_v51 }
 0xc7a   :  { %4358 = vmatprep.subr.bf16.mxu0 %v4357_v22 }
 0xc7b   :  { %v1544_v53 = vmul.f32 %v1534_v7, %v1534_v7  ;;  %v1550_v6 = vsub.f32 %v5162_v17, %v1534_v7  ;;  %4360 = vmatpush3.bf16.msra.mxu0 %v4357_v22 }
 0xc7c   :  { %v1539_v52 = vpop.xlane.xlu0 %1538  ;;  %4362 = vmatprep.subr.bf16.mxu0 %v4361_v42 }
 0xc7d   :  { %v1542_v54 = vmul.f32 0.03125, %v1539_v52 }
 0xc7f   :  { %v1546_v38 = vsub.f32 %v1542_v54, %v1544_v53  ;;  %4364 = vmatpush3.bf16.msra.mxu0 %v4361_v42 }
 0xc80   :  { %v1541_v61 = vpop.xlane.xlu0 %1540  ;;  %4366 = vmatprep.subr.bf16.mxu0 %v4365_v27 }
 0xc81   :  { %v1548_v56 = vmax.f32 %v1546_v38, 0.0  ;;  %v1543_v57 = vmul.f32 0.03125, %v1541_v61 }
 0xc83   :  { %v1552_v58 = vadd.f32 1e-12, %v1548_v56  ;;  %v1547_v59 = vsub.f32 %v1543_v57, %v1545_v39  ;;  %4368 = vmatpush3.bf16.msra.mxu0 %v4365_v27  ;;  %v1796_v27 = vld [vmem:[#allocation2 + $0x1b8] sm:$0xff] }
 0xc84   :  { %4370 = vmatprep.subr.bf16.mxu0 %v4369_v31 }
 0xc85   :  { %4704 = vrsqrt.f32 %v1552_v58  ;;  %v1549_v60 = vmax.f32 %v1547_v59, 0.0 }
 0xc87   :  { %v1553_v62 = vadd.f32 1e-12, %v1549_v60  ;;  %4372 = vmatpush3.bf16.msra.mxu0 %v4369_v31  ;;  %v1795_v31 = vld [vmem:[#allocation2 + $0x1b0] sm:$0xff] }
 0xc88   :  { %4374 = vmatprep.subr.bf16.mxu0 %v4373_v33 }
 0xc89   :  { %4706 = vrsqrt.f32 %v1553_v62 }
 0xc8b   :  { %4376 = vmatpush3.bf16.msra.mxu0 %v4373_v33 }
 0xc8c   :  { %4378 = vmatprep.subr.bf16.mxu0 %v4377_v36 }
 0xc8f   :  { %v4705_v8 = vpop.eup %4704  ;;  %4380 = vmatpush3.bf16.msra.mxu0 %v4377_v36  ;;  %v1797_v36 = vld [vmem:[#allocation2 + $0x1c0] sm:$0xff] }
 0xc90   :  { %v1556_v5 = vmul.f32 %v4705_v8, %v1550_v6  ;;  %4382 = vmatprep.subr.bf16.mxu0 %v4381_v0 }
 0xc92   :  { %v1562_v13 = vmul.f32 %v1561_v50, %v1556_v5 }
 0xc93   :  { %v4707_v14 = vpop.eup %4706  ;;  %4384 = vmatpush3.bf16.msra.mxu0 %v4381_v0  ;;  %v1801_v0 = vld [vmem:[#allocation2 + $0x1e0] sm:$0xff] }
 0xc94   :  { %v5179_v15 = vadd.f32 %v1567_v9, %v1562_v13  ;;  %v1557_v16 = vmul.f32 %v4707_v14, %v1551_v12  ;;  %v1790_v13 = vld [vmem:[#allocation2 + $0x188] sm:$0xff]  ;;  %v1793_v14 = vld [vmem:[#allocation2 + $0x1a0] sm:$0xff]  ;;  %4418 = vmatprep.subr.bf16.mxu0 %v4417_v32 }
 0xc96   :  { %3942 = vmatprep.mubr.f32.mxu1 %v5179_v15  ;;  %v1563_v17 = vmul.f32 %v1561_v50, %v1557_v16  ;;  %v1789_v16 = vld [vmem:[#allocation2 + $0x180] sm:$0xff] }
 0xc97   :  { %v4387_v20 = vpack.c.bf16 %v1792_v19, %v1789_v16  ;;  %v1818_v16 = vld [vmem:[#allocation2 + $0x268] sm:$0xff] }
 0xc98   :  { %v5182_v18 = vadd.f32 %v1567_v9, %v1563_v17  ;;  %v4385_v17 = vpack.c.bf16 %v1793_v14, %v1790_v13  ;;  %v1815_v13 = vld [vmem:[#allocation2 + $0x250] sm:$0xff]  ;;  %v1822_v19 = vld [vmem:[#allocation2 + $0x288] sm:$0xff] }
 0xc9a   :  { %3943 = vmatmul.mubr.f32.vlgmr.msra.gmra.mrb[16].mxu1 %v5182_v18  ;;  %4386 = vmatprep.subr.bf16.mxu1 %v4385_v17  ;;  %v1819_v17 = vld [vmem:[#allocation2 + $0x270] sm:$0xff] }
 0xc9b   :  { %1955 = vmatprep.mubr.f32.mxu1 %v4839_v55  ;;  %4388 = vmatpush1.bf16.msra.mxu1 %v4387_v20  ;;  %v4433_v20 = vpack.c.bf16 %v1818_v16, %v1815_v13 }
 0xd6d   :  { %v3944_v49 = vpop.f32.mrb[16].mxu1 }
 0xd6e   :  { %v1646_v51 = vadd.f32 %v3944_v49, %v1573_v48  ;;  %v1640_v7 = vpop.f32.mrb[17].mxu1  ;;  %v4421_v49 = vpack.c.bf16 %v1800_v40, %v1797_v36  ;;  %v1836_v40 = vld [vmem:[#allocation2 + $0x2f8] sm:$0xff] }
 0xd6f   :  { %v1641_v52 = vadd.f32 %v1640_v7, %v1573_v48  ;;  %v1804_v48 = vld [vmem:[#allocation2 + $0x1f8] sm:$0xff] }
 0xd70   :  { %v1650_v10 = vmul.f32 %v1646_v51, %v1646_v51  ;;  %v1808_v7 = vld [vmem:[#allocation2 + $0x218] sm:$0xff] }
 0xd71   :  { %v1649_v53 = vmul.f32 %v1641_v52, %v1641_v52 }
 0xd72   :  { %v1652_v54 = vmul.f32 %v1650_v10, %v1646_v51  ;;  %v1803_v10 = vld [vmem:[#allocation2 + $0x1f0] sm:$0xff] }
 0xd73   :  { %v1651_v38 = vmul.f32 %v1649_v53, %v1641_v52 }
 0xd74   :  { %v1654_v61 = vmul.f32 0.044715, %v1652_v54  ;;  %v1806_v54 = vld [vmem:[#allocation2 + $0x208] sm:$0xff] }
 0xd75   :  { %v1653_v39 = vmul.f32 0.044715, %v1651_v38  ;;  %v1807_v38 = vld [vmem:[#allocation2 + $0x210] sm:$0xff] }
 0xd76   :  { %v1656_v56 = vadd.f32 %v1654_v61, %v1646_v51  ;;  %v1810_v61 = vld [vmem:[#allocation2 + $0x228] sm:$0xff] }
 0xd77   :  { %v1655_v57 = vadd.f32 %v1653_v39, %v1641_v52  ;;  %v4425_v39 = vpack.c.bf16 %v1806_v54, %v1803_v10 }
 0xd78   :  { %v1658_v58 = vmul.f32 0.7978846, %v1656_v56  ;;  %v4399_v56 = vpack.c.bf16 %v1810_v61, %v1807_v38 }
 0xd79   :  { %v1657_v59 = vmul.f32 0.7978846, %v1655_v57  ;;  %v1814_v57 = vld [vmem:[#allocation2 + $0x248] sm:$0xff] }
 0xd7a   :  { %4708 = vtanh.f32 %v1658_v58  ;;  %v1817_v58 = vld [vmem:[#allocation2 + $0x260] sm:$0xff] }
 0xd7b   :  { %4710 = vtanh.f32 %v1657_v59  ;;  %v1809_v59 = vld [vmem:[#allocation2 + $0x220] sm:$0xff] }
 0xd84   :  { %v4709_v60 = vpop.eup %4708 }
 0xd85   :  { %v4711_v62 = vpop.eup %4710  ;;  %v1662_v6 = vadd.f32 1.0, %v4709_v60  ;;  %v4401_v60 = vpack.c.bf16 %v1817_v58, %v1814_v57 }
 0xd86   :  { %v1661_v50 = vadd.f32 1.0, %v4711_v62  ;;  %v1812_v62 = vld [vmem:[#allocation2 + $0x238] sm:$0xff] }
 0xd87   :  { %v1664_v8 = vmul.f32 0.5, %v1662_v6  ;;  %v1813_v6 = vld [vmem:[#allocation2 + $0x240] sm:$0xff] }
 0xd88   :  { %v1663_v5 = vmul.f32 0.5, %v1661_v50  ;;  %v1816_v50 = vld [vmem:[#allocation2 + $0x258] sm:$0xff] }
 0xd89   :  { %v1666_v12 = vmul.f32 %v1664_v8, %v1646_v51  ;;  %v4395_v51 = vpack.c.bf16 %v1804_v48, %v1801_v0  ;;  %v4429_v8 = vpack.c.bf16 %v1812_v62, %v1809_v59  ;;  %v213_v62 = vld [vmem:[%s5445_s7 + $0x8] sm:$0x3] }
 0xd8a   :  { %v1665_v9 = vmul.f32 %v1663_v5, %v1641_v52  ;;  %v1811_v52 = vld [vmem:[#allocation2 + $0x230] sm:$0xff]  ;;  %v4403_v5 = vpack.c.bf16 %v1816_v50, %v1813_v6  ;;  %v1779_v50 = vrot.slane %v213_v62, %v4967_v43 }
 0xd8b   :  { %v4397_v53 = vpack.c.bf16 %v1811_v52, %v1808_v7 }
 0xd8c   :  { %3977 = vmatprep.mubr.f32.mxu0 %v1665_v9  ;;  %v1820_v9 = vld [vmem:[#allocation2 + $0x278] sm:$0xff] }
 0xd8d   :  { %3978 = vmatmul.mubr.f32.vlgmr.msra.gmra.mrb[8].mxu0 %v1666_v12  ;;  %v1823_v12 = vld [vmem:[#allocation2 + $0x290] sm:$0xff] }
 0xd8e   :  { %4420 = vmatpush3.bf16.msra.mxu0 %v4417_v32  ;;  %v4405_v14 = vpack.c.bf16 %v1823_v12, %v1820_v9  ;;  %v1830_v32 = vld [vmem:[#allocation2 + $0x2c8] sm:$0xff]  ;;  %v1785_v9 = vrot.slane %v213_v62, %v4978_v47  ;;  %v5278_v62 = vld [vmem:[%s5439_s1] sm:$0xff] }
 0xd8f   :  { %4422 = vmatprep.subr.bf16.mxu0 %v4421_v49 }
 0xd92   :  { %4424 = vmatpush3.bf16.msra.mxu0 %v4421_v49 }
 0xd93   :  { %4426 = vmatprep.subr.bf16.mxu0 %v4425_v39 }
 0xd96   :  { %4428 = vmatpush3.bf16.msra.mxu0 %v4425_v39 }
 0xd97   :  { %4430 = vmatprep.subr.bf16.mxu0 %v4429_v8 }
 0xd9a   :  { %4432 = vmatpush3.bf16.msra.mxu0 %v4429_v8 }
 0xd9b   :  { %4434 = vmatprep.subr.bf16.mxu0 %v4433_v20 }
 0xd9e   :  { %4436 = vmatpush3.bf16.msra.mxu0 %v4433_v20 }
 0xe60   :  { %v3979_v41 = vpop.f32.mrb[8].mxu0 }
 0xe61   :  { %v1743_v22 = vadd.f32 %v3979_v41, %v1670_v4  ;;  %v1737_v23 = vpop.f32.mrb[9].mxu0  ;;  %v1826_v41 = vld [vmem:[#allocation2 + $0x2a8] sm:$0xff] }
 0xe62   :  { %v1738_v24 = vadd.f32 %v1737_v23, %v1670_v4  ;;  %v4407_v4 = vpack.c.bf16 %v1822_v19, %v1819_v17  ;;  %v1821_v23 = vld [vmem:[#allocation2 + $0x280] sm:$0xff] }
 0xe63   :  { %v5195_v42 = vadd.f32 %v1743_v22, %v5182_v18  ;;  %v4389_v18 = vpack.c.bf16 %v1799_v28, %v1796_v27  ;;  %v1829_v22 = vld [vmem:[#allocation2 + $0x2c0] sm:$0xff]  ;;  %v1828_v27 = vld [vmem:[#allocation2 + $0x2b8] sm:$0xff] }
 0xe64   :  { %v5198_v25 = vadd.f32 %v1738_v24, %v5179_v15  ;;  %v1798_v15 = vld [vmem:[#allocation2 + $0x1c8] sm:$0xff]  ;;  %v4409_v24 = vpack.c.bf16 %v1829_v22, %v1826_v41 }
 0xe65   :  { %1750 = vadd.xlane.f32.xlu0 %v5195_v42  ;;  %v1755_v44 = vmul.f32 %v5195_v42, %v5195_v42  ;;  %v4391_v33 = vpack.c.bf16 %v1798_v15, %v1795_v31  ;;  %4390 = vmatprep.subr.bf16.mxu1 %v4389_v18  ;;  %v1832_v18 = vld [vmem:[#allocation2 + $0x2d8] sm:$0xff]  ;;  %v1827_v31 = vld [vmem:[#allocation2 + $0x2b0] sm:$0xff] }
 0xe66   :  { %1748 = vadd.xlane.f32.xlu1 %v5198_v25  ;;  %v1754_v26 = vmul.f32 %v5198_v25, %v5198_v25  ;;  %v4413_v15 = vpack.c.bf16 %v1835_v30, %v1832_v18  ;;  %v4441_v35 = vpack.c.bf16 %v1830_v32, %v1827_v31 }
 0xe67   :  { %4392 = vmatpush1.bf16.msra.mxu1 %v4391_v33  ;;  %v1831_v33 = vld [vmem:[#allocation2 + $0x2d0] sm:$0xff] }
 0xe68   :  { %4394 = vmatprep.subr.bf16.mxu1 %v4393_v37  ;;  %v4415_v36 = vpack.c.bf16 %v1834_v34, %v1831_v33  ;;  %v1833_v37 = vld [vmem:[#allocation2 + $0x2e0] sm:$0xff] }
 0xe69   :  { %1756 = vadd.xlane.f32.xlu0 %v1754_v26  ;;  %v1824_v26 = vld [vmem:[#allocation2 + $0x298] sm:$0xff]  ;;  %v4445_v0 = vpack.c.bf16 %v1836_v40, %v1833_v37 }
 0xe6a   :  { %v4437_v28 = vpack.c.bf16 %v1824_v26, %v1821_v23 }
 0xe6b   :  { %4396 = vmatpush1.bf16.msra.mxu1 %v4395_v51 }
 0xe6c   :  { %4398 = vmatprep.subr.bf16.mxu1 %v4397_v53  ;;  %4438 = vmatprep.subr.bf16.mxu0 %v4437_v28 }
 0xe6d   :  { %1758 = vadd.xlane.f32.xlu0 %v1755_v44  ;;  %v1825_v44 = vld [vmem:[#allocation2 + $0x2a0] sm:$0xff]  ;;  %4440 = vmatpush3.bf16.msra.mxu0 %v4437_v28 }
 0xe6e   :  { %v4411_v29 = vpack.c.bf16 %v1828_v27, %v1825_v44  ;;  %4442 = vmatprep.subr.bf16.mxu0 %v4441_v35 }
 0xe6f   :  { %4400 = vmatpush1.bf16.msra.mxu1 %v4399_v56 }
 0xe70   :  { %4402 = vmatprep.subr.bf16.mxu1 %v4401_v60 }
 0xe71   :  { %4444 = vmatpush3.bf16.msra.mxu0 %v4441_v35 }
 0xe72   :  { %4446 = vmatprep.subr.bf16.mxu0 %v4445_v0 }
 0xe73   :  { %4404 = vmatpush1.bf16.msra.mxu1 %v4403_v5 }
 0xe74   :  { %4406 = vmatprep.subr.bf16.mxu1 %v4405_v14 }
 0xe75   :  { %4448 = vmatpush3.bf16.msra.mxu0 %v4445_v0 }
 0xe77   :  { %4408 = vmatpush1.bf16.msra.mxu1 %v4407_v4 }
 0xe78   :  { %4410 = vmatprep.subr.bf16.mxu1 %v4409_v24 }
 0xe7b   :  { %4412 = vmatpush1.bf16.msra.mxu1 %v4411_v29 }
 0xe7c   :  { %4414 = vmatprep.subr.bf16.mxu1 %v4413_v15 }
 0xe7f   :  { %4416 = vmatpush1.bf16.msra.mxu1 %v4415_v36 }
 0xef2   :  { %v1751_v48 = vpop.xlane.xlu0 %1750 }
 0xef3   :  { %v1749_v49 = vpop.xlane.xlu1 %1748  ;;  %v1753_v10 = vmul.f32 0.03125, %v1751_v48 }
 0xef4   :  { %v1752_v51 = vmul.f32 0.03125, %v1749_v49 }
 0xef5   :  { %v1763_v61 = vmul.f32 %v1753_v10, %v1753_v10  ;;  %v1769_v12 = vsub.f32 %v5195_v42, %v1753_v10  ;;  %v5225_v42 = vld [vmem:[%s5445_s7 + $0x10] sm:$0xff] }
 0xef6   :  { %v1762_v7 = vmul.f32 %v1752_v51, %v1752_v51  ;;  %v1757_v52 = vpop.xlane.xlu0 %1756  ;;  %v1768_v6 = vsub.f32 %v5198_v25, %v1752_v51  ;;  %v2046_v20 = vrot.slane %v5225_v42, %v4967_v43  ;;  %v2052_v23 = vrot.slane %v5225_v42, %v4978_v47 }
 0xef7   :  { %v1760_v53 = vmul.f32 0.03125, %v1757_v52 }
 0xef9   :  { %v1764_v54 = vsub.f32 %v1760_v53, %v1762_v7 }
 0xefa   :  { %v1759_v38 = vpop.xlane.xlu0 %1758 }
 0xefb   :  { %v1766_v39 = vmax.f32 %v1764_v54, 0.0  ;;  %v1761_v56 = vmul.f32 0.03125, %v1759_v38 }
 0xefd   :  { %v1770_v57 = vadd.f32 1e-12, %v1766_v39  ;;  %v1765_v58 = vsub.f32 %v1761_v56, %v1763_v61 }
 0xeff   :  { %4712 = vrsqrt.f32 %v1770_v57  ;;  %v1767_v59 = vmax.f32 %v1765_v58, 0.0 }
 0xf01   :  { %v1771_v60 = vadd.f32 1e-12, %v1767_v59  ;;  %v5272_v59 = vld [vmem:[%s5439_s1 + $0x8] sm:$0xff] }
 0xf03   :  { %4714 = vrsqrt.f32 %v1771_v60 }
 0xf09   :  { %v4713_v8 = vpop.eup %4712 }
 0xf0a   :  { %v1774_v5 = vmul.f32 %v4713_v8, %v1768_v6 }
 0xf0c   :  { %v1780_v13 = vmul.f32 %v1779_v50, %v1774_v5 }
 0xf0d   :  { %v4715_v14 = vpop.eup %4714 }
 0xf0e   :  { %v5213_v16 = vadd.f32 %v1785_v9, %v1780_v13  ;;  %v1775_v17 = vmul.f32 %v4715_v14, %v1769_v12 }
 0xf10   :  { %1956 = vmatmul.mubr.f32.vlgmr.msra.gmra.mrb[18].mxu1 %v5213_v16  ;;  %4012 = vmatprep.mubr.f32.mxu0 %v5213_v16  ;;  %v1781_v19 = vmul.f32 %v1779_v50, %v1775_v17 }
 0xf11   :  { %1961 = vmatprep.mubr.f32.mxu1 %v4839_v55  ;;  %v2058_v55 = vrot.slane %v5225_v42, %v380_v45 }
 0xf12   :  { %v5218_v25 = vadd.f32 %v1785_v9, %v1781_v19 }
 0xf14   :  { %1962 = vmatmul.mubr.f32.gmra.mrb[20].mxu1 %v5218_v25  ;;  %4013 = vmatmul.mubr.f32.vlgmr.msra.gmra.mrb[10].mxu0 %v5218_v25 }
 0xfe3   :  { %v1957_v4 = vpop.f32.mrb[18].mxu1 }
 0xfe4   :  { %v5229_v41 = vadd.f32 %v2046_v20, %v1957_v4  ;;  %v1959_v22 = vpop.f32.mrb[19].mxu1 }
 0xfe5   :  { %v2053_v29 = vadd.f32 %v2052_v23, %v1959_v22 }
 0xfe6   :  { %4019 = vmatprep.mubr.msk.f32.mxu1 %vm384_vm0, %v5229_v41 }
 0xfe7   :  { %v1963_v24 = vpop.f32.mrb[20].mxu1  ;;  %v4014_v26 = vpop.f32.mrb[10].mxu0 }
 0xfe8   :  { %v2060_v44 = vadd.f32 %v4014_v26, %v2058_v55  ;;  %v1965_v27 = vpop.f32.mrb[21].mxu1  ;;  %v2034_v28 = vpop.f32.mrb[11].mxu0  ;;  %v2048_v45 = vadd.f32 %v2046_v20, %v1963_v24 }
 0xfe9   :  { %v2054_v18 = vadd.f32 %v2052_v23, %v1965_v27  ;;  %v2059_v30 = vadd.f32 %v2058_v55, %v2034_v28 }
 0xfeb   :  { %v4455_v31 = vpack.c.bf16 %v2060_v44, %v2059_v30  ;;  %v5238_v15 = vpack.i.bf16 %v2054_v18, %v2053_v29  ;;  %v4449_v32 = vpack.c.bf16 %v2054_v18, %v2053_v29  ;;  %v5240_v33 = vpack.i.bf16 %v2060_v44, %v2059_v30 }
 0xfed   :  { %4456 = vmatprep.subr.bf16.mxu0 %v4455_v31  ;;  %4644 = vrot.lane.b32.xlu1 %v5238_v15, %s4841_s10 }
 0xfee   :  { %4639 = vrot.lane.b32.xlu0 %v5238_v15, %s4840_s9  ;;  %4451 = vmatprep.subr.msk.bf16.mxu1 %vm4993_vm1, %v4449_v32 }
 0xfef   :  { %4454 = vmatpush3.bf16.xpose.msk.msra.mxu1 %vm4993_vm1, %v4449_v32  ;;  %4458 = vmatpush3.bf16.msra.mxu0 %v4455_v31 }
 0xff2   :  { %2255 = vrot.lane.b32.xlu0 %v5229_v41, %s4840_s9 }
 0xff6   :  { %2257 = vrot.lane.b32.xlu0 %v2048_v45, %s4840_s9  ;;  %4020 = vmatmul.mubr.msk.f32.vlgmr.msra.gmra.mrb[22].mxu1 %vm384_vm0, %v2048_v45 }
 0xffa   :  { %2623 = vrot.lane.b32.xlu0 %v5229_v41, %s4841_s10 }
 0xffe   :  { %2625 = vrot.lane.b32.xlu0 %v2048_v45, %s4841_s10 }
0x105f   :  { %v4645_v34 = vpop.permute.xlu1 %4644 }
0x1060   :  { %v4640_v35 = vpop.permute.xlu0 %4639  ;;  %v4647_v36 = vunpack.i.h.bf16 %v4645_v34  ;;  %v4646_v37 = vunpack.i.l.bf16 %v4645_v34 }
0x1061   :  { %v4642_v40 = vunpack.i.h.bf16 %v4640_v35  ;;  %v4641_v0 = vunpack.i.l.bf16 %v4640_v35 }
0x1062   :  { %v4485_v51 = vpack.c.bf16 %v4647_v36, %v4646_v37 }
0x1063   :  { %v4459_v48 = vpack.c.bf16 %v4642_v40, %v4641_v0 }
0x1064   :  { %v2256_v49 = vpop.permute.xlu0 %2255 }
0x1065   :  { %4461 = vmatprep.subr.msk.bf16.mxu1 %vm4993_vm1, %v4459_v48  ;;  %4033 = vmatprep.mubr.msk.f32.mxu1 %vm384_vm0, %v2256_v49 }
0x1066   :  { %4464 = vmatpush3.bf16.xpose.msk.msra.mxu1 %vm4993_vm1, %v4459_v48 }
0x1067   :  { %4487 = vmatprep.subr.msk.bf16.mxu1 %vm4993_vm1, %v4485_v51 }
0x1068   :  { %v2258_v7 = vpop.permute.xlu0 %2257 }
0x106c   :  { %v2624_v52 = vpop.permute.xlu0 %2623 }
0x106d   :  { %4034 = vmatmul.mubr.msk.f32.vlgmr.msra.gmra.mrb[24].mxu1 %vm384_vm0, %v2258_v7 }
0x106e   :  { %4490 = vmatpush3.bf16.xpose.msk.msra.mxu1 %vm4993_vm1, %v4485_v51  ;;  %4069 = vmatprep.mubr.msk.f32.mxu1 %vm384_vm0, %v2624_v52 }
0x1070   :  { %v2626_v10 = vpop.permute.xlu0 %2625 }
0x1075   :  { %4070 = vmatmul.mubr.msk.f32.vlgmr.msra.gmra.mrb[26].mxu1 %vm384_vm0, %v2626_v10 }
0x10c9   :  { %v4021_v53 = vpop.f32.mrb[22].mxu1 }
0x10ca   :  { %v2139_v54 = vpop.f32.mrb[23].mxu1  ;;  %v2149_v5 = vmul.f32 0.35355338, %v4021_v53 }
0x10cb   :  { %v2148_v28 = vmul.f32 0.35355338, %v2139_v54 }
0x10cc   :  { %v2151_v9 = vadd.f32 %v5272_v59, %v2149_v5 }
0x10cd   :  { %v2150_v18 = vadd.f32 %v5278_v62, %v2148_v28 }
0x10ce   :  { %v2155_v12 = vsel %vm476_vm2, %v2151_v9, -inf }
0x10cf   :  { %v2152_v31 = vsel %vm476_vm2, %v2150_v18, -inf }
0x1140   :  { %v4035_v38 = vpop.f32.mrb[24].mxu1 }
0x1141   :  { %v2337_v61 = vpop.f32.mrb[25].mxu1  ;;  %v2347_v30 = vmul.f32 0.35355338, %v4035_v38 }
0x1142   :  { %v2346_v29 = vmul.f32 0.35355338, %v2337_v61 }
0x1143   :  { %v2349_v34 = vadd.f32 %v5272_v59, %v2347_v30 }
0x1144   :  { %v2348_v32 = vadd.f32 %v5278_v62, %v2346_v29 }
0x1145   :  { %v2353_v35 = vsel %vm476_vm2, %v2349_v34, -inf }
0x1148   :  { %v4071_v39 = vpop.f32.mrb[26].mxu1 }
0x1149   :  { %v2715_v56 = vmul.f32 0.35355338, %v4071_v39  ;;  %v2705_v57 = vpop.f32.mrb[27].mxu1 }
0x114a   :  { %v2714_v58 = vmul.f32 0.35355338, %v2705_v57 }
0x114b   :  { %v2717_v60 = vadd.f32 %v5272_v59, %v2715_v56 }
0x114c   :  { %v2716_v6 = vadd.f32 %v5278_v62, %v2714_v58 }
0x114d   :  { %v2721_v50 = vsel %vm476_vm2, %v2717_v60, -inf }
0x114e   :  { %2722 = vmax.xlane.f32.xlu1 %v2721_v50  ;;  %v2718_v8 = vsel %vm476_vm2, %v2716_v6, -inf }
0x114f   :  { %2719 = vmax.xlane.f32.xlu0 %v2718_v8 }
0x115f   :  { %4649 = vrot.lane.b32.xlu1 %v5240_v33, %s4841_s10 }
0x1163   :  { %2910 = vrot.lane.b32.xlu1 %v5229_v41, %s4842_s6 }
0x1167   :  { %2912 = vrot.lane.b32.xlu1 %v2048_v45, %s4842_s6  ;;  %v2350_v45 = vsel %vm476_vm2, %v2348_v32, -inf }
0x118b   :  { %2156 = vmax.xlane.f32.xlu1 %v2155_v12 }
0x11db   :  { %v2723_v13 = vpop.xlane.xlu1 %2722 }
0x11dc   :  { %v2725_v14 = vsub.f32 %v2717_v60, %v2723_v13  ;;  %v2720_v17 = vpop.xlane.xlu0 %2719 }
0x11dd   :  { %v2724_v19 = vsub.f32 %v2716_v6, %v2720_v17 }
0x11de   :  { %v2728_v20 = vmul.f32 1.442695, %v2725_v14 }
0x11df   :  { %v2726_v4 = vmul.f32 1.442695, %v2724_v19  ;;  %v4650_v22 = vpop.permute.xlu1 %4649 }
0x11e0   :  { %4716 = vpow2.f32 %v2728_v20  ;;  %v4652_v55 = vunpack.i.h.bf16 %v4650_v22  ;;  %v4651_v23 = vunpack.i.l.bf16 %v4650_v22 }
0x11e1   :  { %4718 = vpow2.f32 %v2726_v4 }
0x11e2   :  { %v4491_v41 = vpack.c.bf16 %v4652_v55, %v4651_v23 }
0x11e3   :  { %v2911_v10 = vpop.permute.xlu1 %2910 }
0x11e4   :  { %4492 = vmatprep.subr.bf16.mxu1 %v4491_v41 }
0x11e5   :  { %4494 = vmatpush3.bf16.msra.mxu1 %v4491_v41 }
0x11e7   :  { %v2913_v53 = vpop.permute.xlu1 %2912 }
0x11ea   :  { %v4717_v24 = vpop.eup %4716 }
0x11eb   :  { %v2733_v26 = vsel %vm476_vm2, %v4717_v24, 0.0  ;;  %v4719_v44 = vpop.eup %4718 }
0x11ec   :  { %2734 = vadd.xlane.f32.xlu0 %v2733_v26  ;;  %v2730_v27 = vsel %vm476_vm2, %v4719_v44, 0.0 }
0x11f0   :  { %2731 = vadd.xlane.f32.xlu0 %v2730_v27 }
0x1206   :  { %4654 = vrot.lane.b32.xlu0 %v5238_v15, %s4842_s6 }
0x1218   :  { %v2157_v61 = vpop.xlane.xlu1 %2156 }
0x1219   :  { %v2159_v39 = vsub.f32 %v2151_v9, %v2157_v61 }
0x121b   :  { %v2162_v58 = vmul.f32 1.442695, %v2159_v39 }
0x1225   :  { %2153 = vmax.xlane.f32.xlu0 %v2152_v31 }
0x1229   :  { %2351 = vmax.xlane.f32.xlu0 %v2350_v45 }
0x122d   :  { %2354 = vmax.xlane.f32.xlu0 %v2353_v35 }
0x1279   :  { %v2735_v36 = vpop.xlane.xlu0 %2734 }
0x127a   :  { %4720 = vrcp.f32 %v2735_v36 }
0x127d   :  { %v2732_v15 = vpop.xlane.xlu0 %2731 }
0x127e   :  { %4722 = vrcp.f32 %v2732_v15 }
0x127f   :  { %4724 = vpow2.f32 %v2162_v58 }
0x1281   :  { %v4655_v37 = vpop.permute.xlu0 %4654 }
0x1282   :  { %v4657_v40 = vunpack.i.h.bf16 %v4655_v37  ;;  %v4656_v0 = vunpack.i.l.bf16 %v4655_v37 }
0x1284   :  { %v4503_v48 = vpack.c.bf16 %v4657_v40, %v4656_v0  ;;  %v4721_v49 = vpop.eup %4720 }
0x1285   :  { %v2739_v52 = vmul.f32 %v4721_v49, %v4717_v24 }
0x1286   :  { %4505 = vmatprep.subr.msk.bf16.mxu1 %vm4993_vm1, %v4503_v48 }
0x1288   :  { %v4723_v51 = vpop.eup %4722 }
0x1289   :  { %v2738_v7 = vmul.f32 %v4723_v51, %v4719_v44  ;;  %v4725_v22 = vpop.eup %4724 }
0x128a   :  { %v2167_v41 = vsel %vm476_vm2, %v4725_v22, 0.0 }
0x128b   :  { %4076 = vmatprep.mubr.msk.f32.mxu1 %vm476_vm2, %v2738_v7 }
0x128c   :  { %4077 = vmatmul.mubr.msk.f32.vlgmr.msra.gmra.mrb[28].mxu1 %vm476_vm2, %v2739_v52 }
0x128d   :  { %4508 = vmatpush3.bf16.xpose.msk.msra.mxu1 %vm4993_vm1, %v4503_v48  ;;  %4094 = vmatprep.mubr.msk.f32.mxu1 %vm384_vm0, %v2911_v10 }
0x1294   :  { %4095 = vmatmul.mubr.msk.f32.vlgmr.msra.gmra.mrb[30].mxu1 %vm384_vm0, %v2913_v53 }
0x12b2   :  { %v2154_v54 = vpop.xlane.xlu0 %2153 }
0x12b3   :  { %v2158_v56 = vsub.f32 %v2150_v18, %v2154_v54 }
0x12b5   :  { %v2160_v50 = vmul.f32 1.442695, %v2158_v56  ;;  %v3509_v56 = vld [vmem:[%s5442_s4 + $0xa0] sm:$0xff] }
0x12b6   :  { %v2352_v38 = vpop.xlane.xlu0 %2351 }
0x12b7   :  { %v2356_v8 = vsub.f32 %v2348_v32, %v2352_v38  ;;  %4726 = vpow2.f32 %v2160_v50  ;;  %v3512_v50 = vld [vmem:[%s5442_s4 + $0xb8] sm:$0xff] }
0x12b9   :  { %v2358_v12 = vmul.f32 1.442695, %v2356_v8  ;;  %v3505_v8 = vld [vmem:[%s5442_s4 + $0x80] sm:$0xff] }
0x12ba   :  { %v2355_v57 = vpop.xlane.xlu0 %2354 }
0x12bb   :  { %v2357_v60 = vsub.f32 %v2349_v34, %v2355_v57  ;;  %v3510_v57 = vld [vmem:[%s5442_s4 + $0xa8] sm:$0xff] }
0x12bc   :  { %v4469_v58 = vpack.c.bf16 %v3510_v57, %v3509_v56  ;;  %v1860_v56 = vld [vmem:[#allocation4 + $0xa8] sm:$0xff] }
0x12bd   :  { %v2360_v2 = vmul.f32 1.442695, %v2357_v60  ;;  %v3511_v60 = vld [vmem:[%s5442_s4 + $0xb0] sm:$0xff] }
0x12bf   :  { %4728 = vpow2.f32 %v2360_v2  ;;  %v3506_v2 = vld [vmem:[%s5442_s4 + $0x88] sm:$0xff] }
0x12c0   :  { %4730 = vpow2.f32 %v2358_v12  ;;  %v4477_v12 = vpack.c.bf16 %v3506_v2, %v3505_v8  ;;  %v1864_v8 = vld [vmem:[#allocation4 + $0xc8] sm:$0xff]  ;;  %v1865_v2 = vld [vmem:[#allocation4 + $0xd0] sm:$0xff] }
0x12c1   :  { %v4727_v23 = vpop.eup %4726 }
0x12c2   :  { %v2164_v26 = vsel %vm476_vm2, %v4727_v23, 0.0 }
0x12c9   :  { %v4729_v24 = vpop.eup %4728 }
0x12ca   :  { %v4731_v44 = vpop.eup %4730 }
0x135f   :  { %v5308_v6 = vpop.f32.mrb[28].mxu1 }
0x1360   :  { %v5310_v5 = vpop.f32.mrb[29].mxu1 }
0x1367   :  { %v4096_v13 = vpop.f32.mrb[30].mxu1 }
0x1368   :  { %v3002_v14 = vmul.f32 0.35355338, %v4096_v13  ;;  %v2992_v17 = vpop.f32.mrb[31].mxu1 }
0x1369   :  { %v3001_v9 = vmul.f32 0.35355338, %v2992_v17 }
0x136a   :  { %v3004_v19 = vadd.f32 %v5272_v59, %v3002_v14  ;;  %v2365_v59 = vsel %vm476_vm2, %v4729_v24, 0.0 }
0x136b   :  { %v3003_v20 = vadd.f32 %v5278_v62, %v3001_v9  ;;  %v2362_v62 = vsel %vm476_vm2, %v4731_v44, 0.0 }
0x136c   :  { %v3008_v4 = vsel %vm476_vm2, %v3004_v19, -inf }
0x136d   :  { %3009 = vmax.xlane.f32.xlu0 %v3008_v4  ;;  %v3005_v55 = vsel %vm476_vm2, %v3003_v20, -inf }
0x136e   :  { %3006 = vmax.xlane.f32.xlu1 %v3005_v55 }
0x1371   :  { %2168 = vadd.xlane.f32.xlu0 %v2167_v41 }
0x1372   :  { %2165 = vadd.xlane.f32.xlu1 %v2164_v26  ;;  %v3507_v26 = vld [vmem:[%s5442_s4 + $0x90] sm:$0xff] }
0x1375   :  { %2366 = vadd.xlane.f32.xlu0 %v2365_v59 }
0x1376   :  { %2363 = vadd.xlane.f32.xlu1 %v2362_v62 }
0x1387   :  { %4659 = vrot.lane.b32.xlu1 %v5240_v33, %s4840_s9 }
0x13fa   :  { %v3010_v27 = vpop.xlane.xlu0 %3009 }
0x13fb   :  { %v3012_v28 = vsub.f32 %v3004_v19, %v3010_v27  ;;  %v3007_v29 = vpop.xlane.xlu1 %3006 }
0x13fc   :  { %v3011_v18 = vsub.f32 %v3003_v20, %v3007_v29  ;;  %v3514_v29 = vld [vmem:[%s5442_s4 + $0xc8] sm:$0xff] }
0x13fd   :  { %v3015_v30 = vmul.f32 1.442695, %v3012_v28  ;;  %v3513_v28 = vld [vmem:[%s5442_s4 + $0xc0] sm:$0xff] }
0x13fe   :  { %v3013_v31 = vmul.f32 1.442695, %v3011_v18  ;;  %v2169_v32 = vpop.xlane.xlu0 %2168  ;;  %v4495_v18 = vpack.c.bf16 %v3514_v29, %v3513_v28 }
0x13ff   :  { %4732 = vpow2.f32 %v3015_v30  ;;  %v2166_v45 = vpop.xlane.xlu1 %2165  ;;  %v3515_v30 = vld [vmem:[%s5442_s4 + $0xd0] sm:$0xff] }
0x1400   :  { %4734 = vpow2.f32 %v3013_v31  ;;  %v3516_v31 = vld [vmem:[%s5442_s4 + $0xd8] sm:$0xff] }
0x1401   :  { %4736 = vrcp.f32 %v2169_v32  ;;  %v4499_v32 = vpack.c.bf16 %v3516_v31, %v3515_v30 }
0x1402   :  { %4738 = vrcp.f32 %v2166_v45  ;;  %v2367_v34 = vpop.xlane.xlu0 %2366  ;;  %v3517_v45 = vld [vmem:[%s5442_s4 + $0xe0] sm:$0xff] }
0x1403   :  { %v2364_v35 = vpop.xlane.xlu1 %2363 }
0x1404   :  { %4740 = vrcp.f32 %v2364_v35 }
0x1405   :  { %4742 = vrcp.f32 %v2367_v34  ;;  %v3518_v34 = vld [vmem:[%s5442_s4 + $0xe8] sm:$0xff] }
0x1406   :  { %v4513_v35 = vpack.c.bf16 %v3518_v34, %v3517_v45 }
0x1407   :  { %v4660_v36 = vpop.permute.xlu1 %4659 }
0x1408   :  { %v4662_v15 = vunpack.i.h.bf16 %v4660_v36  ;;  %v4661_v37 = vunpack.i.l.bf16 %v4660_v36  ;;  %v3519_v36 = vld [vmem:[%s5442_s4 + $0xf0] sm:$0xff] }
0x1409   :  { %v4733_v40 = vpop.eup %4732 }
0x140a   :  { %v4735_v0 = vpop.eup %4734  ;;  %v4465_v48 = vpack.c.bf16 %v4662_v15, %v4661_v37  ;;  %v3020_v49 = vsel %vm476_vm2, %v4733_v40, 0.0  ;;  %v3520_v15 = vld [vmem:[%s5442_s4 + $0xf8] sm:$0xff] }
0x140b   :  { %v4737_v51 = vpop.eup %4736  ;;  %3021 = vadd.xlane.f32.xlu0 %v3020_v49  ;;  %v3017_v54 = vsel %vm476_vm2, %v4735_v0, 0.0  ;;  %v4517_v37 = vpack.c.bf16 %v3520_v15, %v3519_v36 }
0x140c   :  { %v4739_v7 = vpop.eup %4738  ;;  %4466 = vmatprep.subr.bf16.mxu0 %v4465_v48  ;;  %v2173_v53 = vmul.f32 %v4737_v51, %v4725_v22 }
0x140d   :  { %v2172_v52 = vmul.f32 %v4739_v7, %v4727_v23 }
0x140e   :  { %v4741_v10 = vpop.eup %4740 }
0x140f   :  { %v4743_v38 = vpop.eup %4742  ;;  %4026 = vmatprep.mubr.msk.f32.mxu0 %vm476_vm2, %v2172_v52  ;;  %3018 = vadd.xlane.f32.xlu0 %v3017_v54  ;;  %v2370_v61 = vmul.f32 %v4741_v10, %v4731_v44  ;;  %v3508_v44 = vld [vmem:[%s5442_s4 + $0x98] sm:$0xff]  ;;  %v1856_v54 = vld [vmem:[#allocation4 + $0x88] sm:$0xff] }
0x1410   :  { %4027 = vmatmul.mubr.msk.f32.vlgmr.msra.gmra.mrb[12].mxu0 %vm476_vm2, %v2173_v53  ;;  %v2371_v39 = vmul.f32 %v4743_v38, %v4729_v24  ;;  %v4481_v27 = vpack.c.bf16 %v3508_v44, %v3507_v26  ;;  %v1855_v53 = vld [vmem:[#allocation4 + $0x80] sm:$0xff] }
0x1411   :  { %4468 = vmatpush3.bf16.msra.mxu0 %v4465_v48  ;;  %4040 = vmatprep.mubr.msk.f32.mxu0 %vm476_vm2, %v2370_v61  ;;  %v4521_v38 = vpack.c.bf16 %v1856_v54, %v1855_v53  ;;  %v1876_v53 = vld [vmem:[#allocation6 + $0xa0] sm:$0xff]  ;;  %v1877_v54 = vld [vmem:[#allocation6 + $0xa8] sm:$0xff] }
0x1412   :  { %4470 = vmatprep.subr.bf16.mxu0 %v4469_v58 }
0x1414   :  { %4041 = vmatmul.mubr.msk.f32.vlgmr.msra.gmra.mrb[14].mxu0 %vm476_vm2, %v2371_v39  ;;  %v1859_v39 = vld [vmem:[#allocation4 + $0xa0] sm:$0xff] }
0x1415   :  { %4472 = vmatpush3.bf16.msra.mxu0 %v4469_v58  ;;  %v4529_v57 = vpack.c.bf16 %v1860_v56, %v1859_v39  ;;  %v1861_v58 = vld [vmem:[#allocation4 + $0xb0] sm:$0xff]  ;;  %v1880_v39 = vld [vmem:[#allocation6 + $0xc0] sm:$0xff]  ;;  %v1881_v56 = vld [vmem:[#allocation6 + $0xc8] sm:$0xff] }
0x1425   :  { %4664 = vrot.lane.b32.xlu0 %v5240_v33, %s4842_s6  ;;  %v4473_v33 = vpack.c.bf16 %v3512_v50, %v3511_v60  ;;  %v1862_v60 = vld [vmem:[#allocation4 + $0xb8] sm:$0xff] }
0x1426   :  { %v4533_v50 = vpack.c.bf16 %v1862_v60, %v1861_v58  ;;  %v1882_v58 = vld [vmem:[#allocation6 + $0xd0] sm:$0xff]  ;;  %v1883_v60 = vld [vmem:[#allocation6 + $0xd8] sm:$0xff] }
0x1427   :  { %4474 = vmatprep.subr.bf16.mxu0 %v4473_v33 }
0x1428   :  { %4476 = vmatpush3.bf16.msra.mxu0 %v4473_v33  ;;  %v1863_v33 = vld [vmem:[#allocation4 + $0xc0] sm:$0xff] }
0x1429   :  { %4478 = vmatprep.subr.bf16.mxu0 %v4477_v12 }
0x1498   :  { %v3022_v13 = vpop.xlane.xlu0 %3021 }
0x1499   :  { %4744 = vrcp.f32 %v3022_v13  ;;  %v1866_v13 = vld [vmem:[#allocation4 + $0xd8] sm:$0xff] }
0x149c   :  { %v3019_v14 = vpop.xlane.xlu0 %3018 }
0x149d   :  { %4746 = vrcp.f32 %v3019_v14  ;;  %v4541_v14 = vpack.c.bf16 %v1866_v13, %v1865_v2  ;;  %v1887_v13 = vld [vmem:[#allocation6 + $0xf8] sm:$0xff] }
0x14a0   :  { %v4665_v17 = vpop.permute.xlu0 %4664 }
0x14a1   :  { %v4667_v9 = vunpack.i.h.bf16 %v4665_v17  ;;  %v4666_v19 = vunpack.i.l.bf16 %v4665_v17  ;;  %v1867_v17 = vld [vmem:[#allocation4 + $0xe0] sm:$0xff] }
0x14a3   :  { %v4509_v20 = vpack.c.bf16 %v4667_v9, %v4666_v19  ;;  %v4745_v4 = vpop.eup %4744  ;;  %v1868_v9 = vld [vmem:[#allocation4 + $0xe8] sm:$0xff] }
0x14a4   :  { %v3026_v23 = vmul.f32 %v4745_v4, %v4733_v40  ;;  %v4545_v19 = vpack.c.bf16 %v1868_v9, %v1867_v17  ;;  %v1870_v4 = vld [vmem:[#allocation4 + $0xf8] sm:$0xff]  ;;  %v3248_v17 = vrot.slane %v5225_v42, %v1572_v46 }
0x14a5   :  { %4510 = vmatprep.subr.bf16.mxu1 %v4509_v20 }
0x14a6   :  { %4512 = vmatpush3.bf16.msra.mxu1 %v4509_v20  ;;  %v1869_v20 = vld [vmem:[#allocation4 + $0xf0] sm:$0xff] }
0x14a7   :  { %v4747_v22 = vpop.eup %4746  ;;  %4522 = vmatprep.subr.bf16.mxu1 %v4521_v38 }
0x14a8   :  { %v3025_v55 = vmul.f32 %v4747_v22, %v4735_v0  ;;  %v3200_v0 = vrot.slane %v5225_v42, %v1524_v11  ;;  %v4549_v22 = vpack.c.bf16 %v1870_v4, %v1869_v20 }
0x14aa   :  { %4101 = vmatprep.mubr.msk.f32.mxu1 %vm476_vm2, %v3025_v55 }
0x14ab   :  { %4102 = vmatmul.mubr.msk.f32.vlgmr.msra.gmra.mrb[32].mxu1 %vm476_vm2, %v3026_v23 }
0x14ac   :  { %4524 = vmatpush3.bf16.msra.mxu1 %v4521_v38  ;;  %v4561_v38 = vpack.c.bf16 %v1877_v54, %v1876_v53 }
0x14e3   :  { %v4028_v41 = vpop.f32.mrb[12].mxu0 }
0x14e4   :  { %v2246_v24 = vpop.f32.mrb[13].mxu0 }
0x14e7   :  { %v4042_v59 = vpop.f32.mrb[14].mxu0 }
0x14e8   :  { %v2452_v62 = vpop.f32.mrb[15].mxu0 }
0x14e9   :  { %4051 = vmatprep.mubr.msk.f32.mxu0 %vm384_vm0, %v2452_v62 }
0x14ea   :  { %4052 = vmatmul.mubr.msk.f32.vlgmr.msra.gmra.mrb[16].mxu0 %vm384_vm0, %v4042_v59 }
0x14eb   :  { %4480 = vmatpush3.bf16.msra.mxu0 %v4477_v12  ;;  %4062 = vmatprep.mubr.msk.f32.mxu0 %vm384_vm0, %v2246_v24  ;;  %v4537_v12 = vpack.c.bf16 %v1864_v8, %v1863_v33  ;;  %v1884_v33 = vld [vmem:[#allocation6 + $0xe0] sm:$0xff]  ;;  %v1885_v8 = vld [vmem:[#allocation6 + $0xe8] sm:$0xff] }
0x14ec   :  { %4482 = vmatprep.subr.bf16.mxu0 %v4481_v27  ;;  %v4577_v2 = vpack.c.bf16 %v1885_v8, %v1884_v33 }
0x14ef   :  { %4484 = vmatpush3.bf16.msra.mxu0 %v4481_v27 }
0x14f0   :  { %4496 = vmatprep.subr.bf16.mxu0 %v4495_v18 }
0x14f2   :  { %4063 = vmatmul.mubr.msk.f32.vlgmr.msra.gmra.mrb[16].mxu0 %vm384_vm0, %v4028_v41 }
0x14f3   :  { %4498 = vmatpush3.bf16.msra.mxu0 %v4495_v18  ;;  %4087 = vmatprep.mubr.msk.f32.mxu0 %vm384_vm0, %v5310_v5 }
0x14f4   :  { %4500 = vmatprep.subr.bf16.mxu0 %v4499_v32 }
0x14f7   :  { %4502 = vmatpush3.bf16.msra.mxu0 %v4499_v32 }
0x14f8   :  { %4514 = vmatprep.subr.bf16.mxu0 %v4513_v35 }
0x14fa   :  { %4088 = vmatmul.mubr.msk.f32.vlgmr.msra.gmra.mrb[16].mxu0 %vm384_vm0, %v5308_v6 }
0x14fb   :  { %4516 = vmatpush3.bf16.msra.mxu0 %v4513_v35  ;;  %v3236_v35 = vrot.slane %v5225_v42, %v1560_v63  ;;  %v1872_v63 = vld [vmem:[#allocation6 + $0x80] sm:$0xff] }
0x14fc   :  { %4518 = vmatprep.subr.bf16.mxu0 %v4517_v37 }
0x14ff   :  { %4520 = vmatpush3.bf16.msra.mxu0 %v4517_v37  ;;  %v3242_v37 = vrot.slane %v5225_v42, %v1566_v3  ;;  %v1874_v3 = vld [vmem:[#allocation6 + $0x90] sm:$0xff] }
0x157e   :  { %v4103_v5 = vpop.f32.mrb[32].mxu1 }
0x157f   :  { %v3105_v40 = vpop.f32.mrb[33].mxu1 }
0x1580   :  { %4112 = vmatprep.mubr.msk.f32.mxu0 %vm384_vm0, %v3105_v40 }
0x1581   :  { %4113 = vmatmul.mubr.msk.f32.vlgmr.msra.gmra.mrb[16].mxu0 %vm384_vm0, %v4103_v5 }
0x1654   :  { %v4114_v48 = vpop.f32.mrb[16].mxu0 }
0x1655   :  { %v3202_v49 = vadd.f32 %v4114_v48, %v3200_v0  ;;  %v3186_v51 = vpop.f32.mrb[17].mxu0 }
0x1656   :  { %v3201_v7 = vadd.f32 %v3200_v0, %v3186_v51 }
0x1657   :  { %v5394_v52 = vadd.f32 %v3202_v49, %v5218_v25  ;;  %v1857_v25 = vld [vmem:[#allocation4 + $0x90] sm:$0xff] }
0x1658   :  { %v5397_v6 = vadd.f32 %v3201_v7, %v5213_v16  ;;  %v1858_v16 = vld [vmem:[#allocation4 + $0x98] sm:$0xff] }
0x1659   :  { %3207 = vadd.xlane.f32.xlu0 %v5394_v52  ;;  %v3212_v11 = vmul.f32 %v5394_v52, %v5394_v52  ;;  %v4525_v61 = vpack.c.bf16 %v1858_v16, %v1857_v25  ;;  %v1878_v25 = vld [vmem:[#allocation6 + $0xb0] sm:$0xff]  ;;  %v1879_v16 = vld [vmem:[#allocation6 + $0xb8] sm:$0xff] }
0x165a   :  { %3205 = vadd.xlane.f32.xlu1 %v5397_v6  ;;  %v3211_v10 = vmul.f32 %v5397_v6, %v5397_v6 }
0x165b   :  { %4526 = vmatprep.subr.bf16.mxu1 %v4525_v61 }
0x165c   :  { %4528 = vmatpush3.bf16.msra.mxu1 %v4525_v61  ;;  %v4565_v61 = vpack.c.bf16 %v1879_v16, %v1878_v25  ;;  %v3522_v16 = vld [vmem:[%s5445_s7 + $0x18] sm:$0x3] }
0x165d   :  { %4530 = vmatprep.subr.bf16.mxu1 %v4529_v57 }
0x165e   :  { %3213 = vadd.xlane.f32.xlu1 %v3211_v10 }
0x1660   :  { %4532 = vmatpush3.bf16.msra.mxu1 %v4529_v57  ;;  %v4569_v57 = vpack.c.bf16 %v1881_v56, %v1880_v39  ;;  %v3454_v39 = vrot.slane %v3522_v16, %v4967_v43 }
0x1661   :  { %4534 = vmatprep.subr.bf16.mxu1 %v4533_v50 }
0x1662   :  { %3215 = vadd.xlane.f32.xlu1 %v3212_v11  ;;  %v1875_v11 = vld [vmem:[#allocation6 + $0x98] sm:$0xff] }
0x1664   :  { %4536 = vmatpush3.bf16.msra.mxu1 %v4533_v50  ;;  %v4573_v50 = vpack.c.bf16 %v1883_v60, %v1882_v58  ;;  %v3460_v60 = vrot.slane %v3522_v16, %v4978_v47 }
0x1665   :  { %4538 = vmatprep.subr.bf16.mxu1 %v4537_v12 }
0x1668   :  { %4540 = vmatpush3.bf16.msra.mxu1 %v4537_v12  ;;  %v1886_v12 = vld [vmem:[#allocation6 + $0xf0] sm:$0xff] }
0x1669   :  { %4542 = vmatprep.subr.bf16.mxu1 %v4541_v14 }
0x166c   :  { %4544 = vmatpush3.bf16.msra.mxu1 %v4541_v14  ;;  %v4581_v14 = vpack.c.bf16 %v1887_v13, %v1886_v12 }
0x166d   :  { %4546 = vmatprep.subr.bf16.mxu1 %v4545_v19 }
0x1670   :  { %4548 = vmatpush3.bf16.msra.mxu1 %v4545_v19 }
0x1671   :  { %4550 = vmatprep.subr.bf16.mxu1 %v4549_v22 }
0x1674   :  { %4552 = vmatpush3.bf16.msra.mxu1 %v4549_v22 }
0x16e6   :  { %v3208_v41 = vpop.xlane.xlu0 %3207 }
0x16e7   :  { %v3206_v55 = vpop.xlane.xlu1 %3205  ;;  %v3210_v26 = vmul.f32 0.03125, %v3208_v41 }
0x16e8   :  { %v3209_v23 = vmul.f32 0.03125, %v3206_v55 }
0x16e9   :  { %v3220_v28 = vmul.f32 %v3210_v26, %v3210_v26  ;;  %v3226_v5 = vsub.f32 %v5394_v52, %v3210_v26  ;;  %v4557_v52 = vpack.c.bf16 %v1875_v11, %v1874_v3 }
0x16ea   :  { %v3219_v44 = vmul.f32 %v3209_v23, %v3209_v23  ;;  %v3225_v34 = vsub.f32 %v5397_v6, %v3209_v23  ;;  %v1873_v6 = vld [vmem:[#allocation6 + $0x88] sm:$0xff] }
0x16eb   :  { %v3214_v24 = vpop.xlane.xlu1 %3213  ;;  %v4553_v10 = vpack.c.bf16 %v1873_v6, %v1872_v63 }
0x16ec   :  { %v3217_v59 = vmul.f32 0.03125, %v3214_v24 }
0x16ed   :  { %4554 = vmatprep.subr.bf16.mxu0 %v4553_v10 }
0x16ee   :  { %v3221_v62 = vsub.f32 %v3217_v59, %v3219_v44  ;;  %4556 = vmatpush3.bf16.msra.mxu0 %v4553_v10 }
0x16ef   :  { %v3216_v27 = vpop.xlane.xlu1 %3215  ;;  %4558 = vmatprep.subr.bf16.mxu0 %v4557_v52 }
0x16f0   :  { %v3223_v29 = vmax.f32 %v3221_v62, 0.0  ;;  %v3218_v18 = vmul.f32 0.03125, %v3216_v27 }
0x16f2   :  { %v3227_v30 = vadd.f32 1e-12, %v3223_v29  ;;  %v3222_v31 = vsub.f32 %v3218_v18, %v3220_v28  ;;  %4560 = vmatpush3.bf16.msra.mxu0 %v4557_v52 }
0x16f3   :  { %4562 = vmatprep.subr.bf16.mxu0 %v4561_v38 }
0x16f4   :  { %4748 = vrsqrt.f32 %v3227_v30  ;;  %v3224_v32 = vmax.f32 %v3222_v31, 0.0 }
0x16f6   :  { %v3228_v45 = vadd.f32 1e-12, %v3224_v32  ;;  %4564 = vmatpush3.bf16.msra.mxu0 %v4561_v38 }
0x16f7   :  { %4566 = vmatprep.subr.bf16.mxu0 %v4565_v61 }
0x16f8   :  { %4750 = vrsqrt.f32 %v3228_v45 }
0x16fa   :  { %4568 = vmatpush3.bf16.msra.mxu0 %v4565_v61 }
0x16fb   :  { %4570 = vmatprep.subr.bf16.mxu0 %v4569_v57 }
0x16fe   :  { %v4749_v36 = vpop.eup %4748  ;;  %4572 = vmatpush3.bf16.msra.mxu0 %v4569_v57 }
0x16ff   :  { %v3231_v15 = vmul.f32 %v4749_v36, %v3225_v34  ;;  %4574 = vmatprep.subr.bf16.mxu0 %v4573_v50  ;;  %v3345_v34 = vrot.slane %v5225_v42, %v1669_v21 }
0x1701   :  { %v3237_v40 = vmul.f32 %v3236_v35, %v3231_v15 }
0x1702   :  { %v4751_v0 = vpop.eup %4750  ;;  %4576 = vmatpush3.bf16.msra.mxu0 %v4573_v50 }
0x1703   :  { %v5413_v48 = vadd.f32 %v3242_v37, %v3237_v40  ;;  %v3232_v49 = vmul.f32 %v4751_v0, %v3226_v5  ;;  %4578 = vmatprep.subr.bf16.mxu0 %v4577_v2 }
0x1705   :  { %4147 = vmatprep.mubr.f32.mxu1 %v5413_v48  ;;  %v3238_v51 = vmul.f32 %v3236_v35, %v3232_v49 }
0x1706   :  { %4580 = vmatpush3.bf16.msra.mxu0 %v4577_v2 }
0x1707   :  { %v5416_v7 = vadd.f32 %v3242_v37, %v3238_v51  ;;  %4582 = vmatprep.subr.bf16.mxu0 %v4581_v14 }
0x1709   :  { %4148 = vmatmul.mubr.f32.vlgmr.msra.gmra.mrb[34].mxu1 %v5416_v7 }
0x170a   :  { %4584 = vmatpush3.bf16.msra.mxu0 %v4581_v14 }
0x17dc   :  { %v4149_v9 = vpop.f32.mrb[34].mxu1 }
0x17dd   :  { %v3321_v19 = vadd.f32 %v4149_v9, %v3248_v17  ;;  %v3315_v20 = vpop.f32.mrb[35].mxu1 }
0x17de   :  { %v3316_v4 = vadd.f32 %v3315_v20, %v3248_v17 }
0x17df   :  { %v3325_v22 = vmul.f32 %v3321_v19, %v3321_v19 }
0x17e0   :  { %v3324_v55 = vmul.f32 %v3316_v4, %v3316_v4 }
0x17e1   :  { %v3327_v23 = vmul.f32 %v3325_v22, %v3321_v19 }
0x17e2   :  { %v3326_v41 = vmul.f32 %v3324_v55, %v3316_v4 }
0x17e3   :  { %v3329_v24 = vmul.f32 0.044715, %v3327_v23 }
0x17e4   :  { %v3328_v26 = vmul.f32 0.044715, %v3326_v41 }
0x17e5   :  { %v3331_v44 = vadd.f32 %v3329_v24, %v3321_v19 }
0x17e6   :  { %v3330_v59 = vadd.f32 %v3328_v26, %v3316_v4 }
0x17e7   :  { %v3333_v62 = vmul.f32 0.7978846, %v3331_v44 }
0x17e8   :  { %v3332_v27 = vmul.f32 0.7978846, %v3330_v59 }
0x17e9   :  { %4752 = vtanh.f32 %v3333_v62 }
0x17ea   :  { %4754 = vtanh.f32 %v3332_v27 }
0x17f3   :  { %v4753_v28 = vpop.eup %4752 }
0x17f4   :  { %v4755_v29 = vpop.eup %4754  ;;  %v3337_v18 = vadd.f32 1.0, %v4753_v28 }
0x17f5   :  { %v3336_v46 = vadd.f32 1.0, %v4755_v29 }
0x17f6   :  { %v3339_v30 = vmul.f32 0.5, %v3337_v18 }
0x17f7   :  { %v3338_v31 = vmul.f32 0.5, %v3336_v46 }
0x17f8   :  { %v3341_v45 = vmul.f32 %v3339_v30, %v3321_v19 }
0x17f9   :  { %v3340_v32 = vmul.f32 %v3338_v31, %v3316_v4 }
0x17fb   :  { %4182 = vmatprep.mubr.f32.mxu0 %v3340_v32 }
0x17fc   :  { %4183 = vmatmul.mubr.f32.vlgmr.msra.gmra.mrb[18].mxu0 %v3341_v45 }
0x18cf   :  { %v4184_v35 = vpop.f32.mrb[18].mxu0 }
0x18d0   :  { %v3418_v36 = vadd.f32 %v4184_v35, %v3345_v34  ;;  %v3412_v15 = vpop.f32.mrb[19].mxu0 }
0x18d1   :  { %v3413_v37 = vadd.f32 %v3412_v15, %v3345_v34 }
0x18d2   :  { %v3422_v5 = vadd.f32 %v3418_v36, %v5416_v7 }
0x18d3   :  { %v3421_v40 = vadd.f32 %v3413_v37, %v5413_v48 }
0x18d4   :  { %3425 = vadd.xlane.f32.xlu0 %v3422_v5  ;;  %v3430_v0 = vmul.f32 %v3422_v5, %v3422_v5 }
0x18d5   :  { %3423 = vadd.xlane.f32.xlu1 %v3421_v40  ;;  %v3429_v49 = vmul.f32 %v3421_v40, %v3421_v40 }
0x18d8   :  { %3433 = vadd.xlane.f32.xlu0 %v3430_v0 }
0x18d9   :  { %3431 = vadd.xlane.f32.xlu1 %v3429_v49 }
0x1961   :  { %v3426_v51 = vpop.xlane.xlu0 %3425 }
0x1962   :  { %v3428_v63 = vmul.f32 0.03125, %v3426_v51  ;;  %v3424_v6 = vpop.xlane.xlu1 %3423 }
0x1963   :  { %v3427_v1 = vmul.f32 0.03125, %v3424_v6 }
0x1964   :  { %v3438_v21 = vmul.f32 %v3428_v63, %v3428_v63  ;;  %v3444_v61 = vsub.f32 %v3422_v5, %v3428_v63 }
0x1965   :  { %v3434_v10 = vpop.xlane.xlu0 %3433  ;;  %v3437_v11 = vmul.f32 %v3427_v1, %v3427_v1  ;;  %v3443_v57 = vsub.f32 %v3421_v40, %v3427_v1 }
0x1966   :  { %v3436_v42 = vmul.f32 0.03125, %v3434_v10  ;;  %v3432_v3 = vpop.xlane.xlu1 %3431 }
0x1967   :  { %v3435_v52 = vmul.f32 0.03125, %v3432_v3 }
0x1968   :  { %v3440_v53 = vsub.f32 %v3436_v42, %v3438_v21 }
0x1969   :  { %v3439_v7 = vsub.f32 %v3435_v52, %v3437_v11 }
0x196a   :  { %v3442_v54 = vmax.f32 %v3440_v53, 0.0 }
0x196b   :  { %v3441_v48 = vmax.f32 %v3439_v7, 0.0 }
0x196c   :  { %v3446_v38 = vadd.f32 1e-12, %v3442_v54 }
0x196d   :  { %v3445_v25 = vadd.f32 1e-12, %v3441_v48 }
0x196e   :  { %4756 = vrsqrt.f32 %v3446_v38 }
0x196f   :  { %4758 = vrsqrt.f32 %v3445_v25 }
0x1978   :  { %v4757_v56 = vpop.eup %4756 }
0x1979   :  { %v4759_v58 = vpop.eup %4758  ;;  %v3450_v50 = vmul.f32 %v4757_v56, %v3444_v61 }
0x197a   :  { %v3449_v33 = vmul.f32 %v4759_v58, %v3443_v57 }
0x197b   :  { %v3456_v8 = vmul.f32 %v3454_v39, %v3450_v50 }
0x197c   :  { %v3455_v2 = vmul.f32 %v3454_v39, %v3449_v33 }
0x197d   :  { %v3462_v12 = vadd.f32 %v3460_v60, %v3456_v8 }
0x197e   :  { %v3461_v13 = vadd.f32 %v3460_v60, %v3455_v2 }
0x197f   :  { %3464 = vst [vmem:[%s5446_s8 + $0x8] sm:$0xff] %v3462_v12 }
0x1980   :  { %3463 = vst [vmem:[%s5446_s8] sm:$0xff] %v3461_v13 }
0x1981   :  { %3469 = vsyncpa [#allocation3], 1 }
0x1982   :  { %3470 = vsyncpa [#allocation5], 1 }

</bundles_post_ra>
